<compile_context>
chip_gen: v7x
topology: tpu7x:2x2x1
jax: 0.10.0
libtpu: 0.0.40
codegen_flags: <defaults>
</compile_context>

<pallas_src>
import math
import jax
import jax.numpy as jnp
from jax.experimental import pallas as pl
from jax.experimental.pallas import tpu as pltpu


LANE = 128


def _round_up(x: int, m: int) -> int:
    return ((x + m - 1) // m) * m


def _cdiv(a: int, b: int) -> int:
    return -(-a // b)


def _device_vmem_bytes(default: int = 64 << 20) -> int:
    """Physical VMEM capacity of the current TPU; conservative 64 MiB fallback."""
    try:
        info = pltpu.get_tpu_info()
        for attr in ("vmem_capacity_bytes", "vmem_bytes", "vmem_size_bytes"):
            v = getattr(info, attr, None)
            if v is None:
                continue
            try:
                v = int(v)
            except (TypeError, ValueError):
                continue
            if v > 0:
                return v
    except Exception:
        pass
    return default


def _make_fcnet_kernel(num_layers: int, sigmoid_out: bool):
    """Fused MLP kernel body: refs = (x, W1, b1, ..., Wn, bn, out)."""

    def kernel(*refs):
        x_ref = refs[0]
        o_ref = refs[-1]
        # Cast to MXU-native bf16 in-kernel (input may arrive as f32, no host copy).
        h = x_ref[...].astype(jnp.bfloat16)                  # (TB, K0p)
        for l in range(num_layers):
            w_ref = refs[1 + 2 * l]                          # bf16 (Kp, Np), VMEM-resident
            b_ref = refs[2 + 2 * l]                          # f32  (1, Np)
            acc = jnp.dot(h, w_ref[...], preferred_element_type=jnp.float32)
            acc = acc + b_ref[...]                           # f32 bias epilogue
            if l < num_layers - 1:
                # ReLU on packed bf16 vregs; identical to f32 ReLU then bf16 cast.
                h = jnp.maximum(acc.astype(jnp.bfloat16), 0.0)
            else:
                h = acc                                      # final layer stays f32
        if sigmoid_out:
            h = jax.nn.sigmoid(h)                            # EUP
        o_ref[...] = h.astype(o_ref.dtype)                   # bf16 writeback

    return kernel


class FCNetPallas:
    """JAX/Pallas port of FCNet(insize, hsizes, act_fn=ReLU, sigmoid_out, batch_norm=False)."""

    def __init__(self, insize, hsizes, sigmoid_out=False, key=None):
        assert len(hsizes) > 0, "Must specify at least one hidden layer size"
        self.insize = insize
        self.hsizes = list(hsizes)
        self.sigmoid_out = sigmoid_out
        # TODO(synk): batch_norm=True (LIBatchNorm1d running stats), custom
        #             init_type schemes, and interpolated_forward are not
        #             implemented; the default batch_norm=False forward path
        #             (torch default Linear init) is fully reproduced.

        if key is None:
            key = jax.random.PRNGKey(0)

        dims = [insize] + self.hsizes
        self.pdims = [_round_up(d, LANE) for d in dims]   # lane-dense padded feature dims

        # Deterministic init mimicking torch.nn.Linear default:
        # U(-1/sqrt(fan_in), 1/sqrt(fan_in)) for both weight and bias.
        # Stored directly in (in, out) layout, zero-padded to (Kp, Np), weights in bf16.
        # TODO(synk): optional fp8 (v7x) / int8 (v5e/v6e) weight quantization with
        #             per-channel scales for the compute-bound large-batch regime.
        self.params = []
        for l, (fan_in, fan_out) in enumerate(zip(dims[:-1], dims[1:])):
            key, kw, kb = jax.random.split(key, 3)
            bound = 1.0 / math.sqrt(fan_in)
            w = jax.random.uniform(kw, (fan_in, fan_out), jnp.float32, -bound, bound)
            b = jax.random.uniform(kb, (fan_out,), jnp.float32, -bound, bound)
            Kp, Np = self.pdims[l], self.pdims[l + 1]
            w_p = jnp.zeros((Kp, Np), jnp.float32).at[:fan_in, :fan_out].set(w)
            b_p = jnp.zeros((1, Np), jnp.float32).at[0, :fan_out].set(b)
            self.params.append((w_p.astype(jnp.bfloat16), b_p))

    # -------------------------------------------------------------------------
    def __call__(self, x):
        B = x.shape[0]
        xf = x.reshape(B, -1)                             # == torch x.view(B, -1)
        assert xf.shape[1] == self.insize, (xf.shape, self.insize)

        K0p = self.pdims[0]
        Nlast_p = self.pdims[-1]

        # ---- batch tile selection -------------------------------------------
        # Big tiles fill the 256x256 MXU rows and amortize the ~0.35us/step grid
        # overhead; for moderate batches force >= 2 grid steps so both v7x
        # TensorCores get work; tiny batches use one 16-row (bf16-packed) tile.
        if B >= 1024:
            TB = 512
        elif B >= 256:
            TB = 256
        elif B >= 32:
            TB = _round_up(_cdiv(B, 2), 16)
        else:
            TB = _round_up(max(B, 1), 16)
        pB = _round_up(B, TB)

        # ---- input prep -------------------------------------------------------
        if self.insize % LANE == 0:
            # Already lane-dense: feed the flattened f32 input directly and cast
            # to bf16 inside the kernel (saves a full padded-copy HBM pass).
            x_in = xf.astype(jnp.float32)
            if pB != B:
                x_in = jnp.pad(x_in, ((0, pB - B), (0, 0)))
        else:
            # Feature dim needs padding anyway -> do the pad+bf16 cast in one pass.
            x_in = jnp.zeros((pB, K0p), jnp.bfloat16).at[:B, :self.insize].set(
                xf.astype(jnp.bfloat16))

        args = [x_in]
        for (w, b) in self.params:
            args.append(w)
            args.append(b)

        kernel = _make_fcnet_kernel(len(self.params), self.sigmoid_out)

        # ---- VMEM budget: ~85% of device capacity (v5e/v6e 128 MiB, v7x 64 MiB).
        resident = sum(w.size * w.dtype.itemsize + b.size * b.dtype.itemsize
                       for (w, b) in self.params)
        vmem_limit = int(0.85 * _device_vmem_bytes())
        # TODO(synk): for very large insize (W1 + x tile approaching vmem_limit),
        #             K-chunk the first layer (K grid axis + f32 VMEM accumulator).

        flops = 2 * pB * sum(w.shape[0] * w.shape[1] for (w, _) in self.params)
        bytes_accessed = (x_in.size * x_in.dtype.itemsize + resident + pB * Nlast_p * 2)
        transcendentals = pB * Nlast_p if self.sigmoid_out else 0

        def run(single_buffer_weights):
            def const_spec(shape):
                if single_buffer_weights:
                    # Constant index_map -> the block never changes; single-buffer
                    # it so resident weights/biases cost 1x VMEM instead of 2x.
                    return pl.BlockSpec(shape, lambda i: (0, 0),
                                        pipeline_mode=pl.Buffered(1))
                return pl.BlockSpec(shape, lambda i: (0, 0))

            in_specs = [pl.BlockSpec((TB, K0p), lambda i: (i, 0))]
            for (w, b) in self.params:
                in_specs.append(const_spec(w.shape))
                in_specs.append(const_spec(b.shape))

            return pl.pallas_call(
                kernel,
                out_shape=jax.ShapeDtypeStruct((pB, Nlast_p), jnp.bfloat16),
                grid=(pB // TB,),
                in_specs=in_specs,
                out_specs=pl.BlockSpec((TB, Nlast_p), lambda i: (i, 0)),
                compiler_params=pltpu.CompilerParams(
                    dimension_semantics=("parallel",),
                    vmem_limit_bytes=vmem_limit),
                cost_estimate=pl.CostEstimate(
                    flops=flops,
                    transcendentals=transcendentals,
                    bytes_accessed=bytes_accessed),
            )(*args)

        try:
            out = run(single_buffer_weights=True)
        except Exception:
            # Fallback for jax builds without Buffered(1) single-buffering support.
            out = run(single_buffer_weights=False)

        # Strip batch / lane padding and upcast outside the kernel.
        return out[:B, :self.hsizes[-1]].astype(jnp.float32)

    # -------------------------------------------------------------------------
    def reference(self, x):
        """Pure-JAX reference with the same bf16 quantization points as the kernel."""
        B = x.shape[0]
        h = x.reshape(B, -1).astype(jnp.float32)
        h = jnp.pad(h, ((0, 0), (0, self.pdims[0] - self.insize)))
        n = len(self.params)
        for l, (w, b) in enumerate(self.params):
            h_q = h.astype(jnp.bfloat16).astype(jnp.float32)   # same quantization as kernel
            h = jnp.dot(h_q, w.astype(jnp.float32),
                        precision=jax.lax.Precision.HIGHEST) + b
            if l < n - 1:
                h = jnp.maximum(h, 0.0)
        if self.sigmoid_out:
            h = jax.nn.sigmoid(h)
        # Mirror the kernel's bf16 output writeback.
        return h[:, :self.hsizes[-1]].astype(jnp.bfloat16).astype(jnp.float32)


if __name__ == "__main__":
    key = jax.random.PRNGKey(0)
    k_x, k_p1, k_p2, k_x2 = jax.random.split(key, 4)

    # Small shapes consistent with the module: NCHW input, flattened to insize.
    B, C, H, W = 2, 4, 16, 16
    insize = C * H * W            # 1024 (lane-dense -> no padded input copy)
    hsizes = [128, 64, 32]

    x = jax.random.normal(k_x, (B, C, H, W), jnp.float32)

    # Plain output head.
    model = FCNetPallas(insize, hsizes, sigmoid_out=False, key=k_p1)
    out = jax.block_until_ready(model(x))
    assert out.shape == (B, hsizes[-1]), out.shape
    ref = jax.block_until_ready(model.reference(x))
    # Tolerance covers bf16 intermediate/output quantization (<=1 ulp, ~0.4% rel).
    assert jnp.allclose(out, ref, atol=1e-2, rtol=1e-2), \
        float(jnp.max(jnp.abs(out - ref)))

    # Sigmoid output head.
    model_s = FCNetPallas(insize, hsizes, sigmoid_out=True, key=k_p2)
    out_s = jax.block_until_ready(model_s(x))
    ref_s = jax.block_until_ready(model_s.reference(x))
    assert out_s.shape == (B, hsizes[-1]), out_s.shape
    assert jnp.allclose(out_s, ref_s, atol=1e-2, rtol=1e-2), \
        float(jnp.max(jnp.abs(out_s - ref_s)))

    # Multi-step grid path (batch remainder padding + 2 "parallel" grid steps).
    B2 = 40
    x2 = jax.random.normal(k_x2, (B2, C, H, W), jnp.float32)
    out2 = jax.block_until_ready(model(x2))
    ref2 = jax.block_until_ready(model.reference(x2))
    assert out2.shape == (B2, hsizes[-1]), out2.shape
    assert jnp.allclose(out2, ref2, atol=1e-2, rtol=1e-2), \
        float(jnp.max(jnp.abs(out2 - ref2)))

    print("KERNEL_OK")
</pallas_src>

<mosaic_0001>
module attributes {stable_mosaic.version = 11 : i64} {
  func.func @kernel(%arg0: i32, %arg1: memref<16x1024xf32, #tpu.memory_space<vmem>>, %arg2: memref<1024x128xbf16, #tpu.memory_space<vmem>>, %arg3: memref<1x128xf32, #tpu.memory_space<vmem>>, %arg4: memref<128x128xbf16, #tpu.memory_space<vmem>>, %arg5: memref<1x128xf32, #tpu.memory_space<vmem>>, %arg6: memref<128x128xbf16, #tpu.memory_space<vmem>>, %arg7: memref<1x128xf32, #tpu.memory_space<vmem>>, %arg8: memref<16x128xbf16, #tpu.memory_space<vmem>>) attributes {dimension_semantics = [#tpu.dimension_semantics<parallel>], iteration_bounds = array<i64: 1>, scalar_prefetch = 0 : i64, scratch_operands = 0 : i64, tpu.core_type = #tpu.core_type<tc>, window_params = [{transform_indices = @transform_0, window_bounds = array<i64: 16, 1024>}, {pipeline_mode = #tpu.pipeline_mode<synchronous>, transform_indices = @transform_1, window_bounds = array<i64: 1024, 128>}, {pipeline_mode = #tpu.pipeline_mode<synchronous>, transform_indices = @transform_2, window_bounds = array<i64: 1, 128>}, {pipeline_mode = #tpu.pipeline_mode<synchronous>, transform_indices = @transform_3, window_bounds = array<i64: 128, 128>}, {pipeline_mode = #tpu.pipeline_mode<synchronous>, transform_indices = @transform_4, window_bounds = array<i64: 1, 128>}, {pipeline_mode = #tpu.pipeline_mode<synchronous>, transform_indices = @transform_5, window_bounds = array<i64: 128, 128>}, {pipeline_mode = #tpu.pipeline_mode<synchronous>, transform_indices = @transform_6, window_bounds = array<i64: 1, 128>}, {transform_indices = @transform_7, window_bounds = array<i64: 16, 128>}]} {
    %c0 = arith.constant 0 : index
    %c0_0 = arith.constant 0 : index
    %0 = vector.load %arg1[%c0, %c0_0] : memref<16x1024xf32, #tpu.memory_space<vmem>>, vector<16x1024xf32>
    %1 = arith.truncf %0 : vector<16x1024xf32> to vector<16x1024xbf16>
    %c0_1 = arith.constant 0 : index
    %c0_2 = arith.constant 0 : index
    %2 = vector.load %arg2[%c0_1, %c0_2] : memref<1024x128xbf16, #tpu.memory_space<vmem>>, vector<1024x128xbf16>
    %cst = arith.constant dense<0.000000e+00> : vector<16x128xf32>
    %3 = tpu.matmul %1, %2, %cst {dimension_numbers = #tpu.dot_dimension_numbers<[1], [0], [0], [1], [0, 0, 1, 1], [], []>} : vector<16x1024xbf16>, vector<1024x128xbf16>, vector<16x128xf32> -> vector<16x128xf32>
    %c0_3 = arith.constant 0 : index
    %c0_4 = arith.constant 0 : index
    %4 = vector.load %arg3[%c0_3, %c0_4] : memref<1x128xf32, #tpu.memory_space<vmem>>, vector<1x128xf32>
    %5 = vector.broadcast %4 : vector<1x128xf32> to vector<16x128xf32>
    %6 = arith.addf %3, %5 : vector<16x128xf32>
    %7 = arith.truncf %6 : vector<16x128xf32> to vector<16x128xbf16>
    %cst_5 = arith.constant 0.000000e+00 : bf16
    %8 = vector.broadcast %cst_5 : bf16 to vector<16x128xbf16>
    %9 = arith.maximumf %7, %8 : vector<16x128xbf16>
    %c0_6 = arith.constant 0 : index
    %c0_7 = arith.constant 0 : index
    %10 = vector.load %arg4[%c0_6, %c0_7] : memref<128x128xbf16, #tpu.memory_space<vmem>>, vector<128x128xbf16>
    %cst_8 = arith.constant dense<0.000000e+00> : vector<16x128xf32>
    %11 = tpu.matmul %9, %10, %cst_8 {dimension_numbers = #tpu.dot_dimension_numbers<[1], [0], [0], [1], [0, 0, 1, 1], [], []>} : vector<16x128xbf16>, vector<128x128xbf16>, vector<16x128xf32> -> vector<16x128xf32>
    %c0_9 = arith.constant 0 : index
    %c0_10 = arith.constant 0 : index
    %12 = vector.load %arg5[%c0_9, %c0_10] : memref<1x128xf32, #tpu.memory_space<vmem>>, vector<1x128xf32>
    %13 = vector.broadcast %12 : vector<1x128xf32> to vector<16x128xf32>
    %14 = arith.addf %11, %13 : vector<16x128xf32>
    %15 = arith.truncf %14 : vector<16x128xf32> to vector<16x128xbf16>
    %cst_11 = arith.constant 0.000000e+00 : bf16
    %16 = vector.broadcast %cst_11 : bf16 to vector<16x128xbf16>
    %17 = arith.maximumf %15, %16 : vector<16x128xbf16>
    %c0_12 = arith.constant 0 : index
    %c0_13 = arith.constant 0 : index
    %18 = vector.load %arg6[%c0_12, %c0_13] : memref<128x128xbf16, #tpu.memory_space<vmem>>, vector<128x128xbf16>
    %cst_14 = arith.constant dense<0.000000e+00> : vector<16x128xf32>
    %19 = tpu.matmul %17, %18, %cst_14 {dimension_numbers = #tpu.dot_dimension_numbers<[1], [0], [0], [1], [0, 0, 1, 1], [], []>} : vector<16x128xbf16>, vector<128x128xbf16>, vector<16x128xf32> -> vector<16x128xf32>
    %c0_15 = arith.constant 0 : index
    %c0_16 = arith.constant 0 : index
    %20 = vector.load %arg7[%c0_15, %c0_16] : memref<1x128xf32, #tpu.memory_space<vmem>>, vector<1x128xf32>
    %21 = vector.broadcast %20 : vector<1x128xf32> to vector<16x128xf32>
    %22 = arith.addf %19, %21 : vector<16x128xf32>
    %23 = arith.truncf %22 : vector<16x128xf32> to vector<16x128xbf16>
    %c0_17 = arith.constant 0 : index
    %c0_18 = arith.constant 0 : index
    %24 = vector.load %arg8[%c0_17, %c0_18] : memref<16x128xbf16, #tpu.memory_space<vmem>>, vector<16x128xbf16>
    tpu.vector_store %arg8[%c0_17, %c0_18], %23 {strides = array<i32>} : memref<16x128xbf16, #tpu.memory_space<vmem>>, vector<16x128xbf16>,
    return
  }
  func.func @transform_0(%arg0: i32) -> (i32, i32) {
    %c0_i32 = arith.constant 0 : i32
    %c0_i32_0 = arith.constant 0 : i32
    return %arg0, %c0_i32 : i32, i32
  }
  func.func @transform_1(%arg0: i32) -> (i32, i32) {
    %c0_i32 = arith.constant 0 : i32
    %c0_i32_0 = arith.constant 0 : i32
    %c0_i32_1 = arith.constant 0 : i32
    return %c0_i32, %c0_i32_0 : i32, i32
  }
  func.func @transform_2(%arg0: i32) -> (i32, i32) {
    %c0_i32 = arith.constant 0 : i32
    %c0_i32_0 = arith.constant 0 : i32
    %c0_i32_1 = arith.constant 0 : i32
    return %c0_i32, %c0_i32_0 : i32, i32
  }
  func.func @transform_3(%arg0: i32) -> (i32, i32) {
    %c0_i32 = arith.constant 0 : i32
    %c0_i32_0 = arith.constant 0 : i32
    %c0_i32_1 = arith.constant 0 : i32
    return %c0_i32, %c0_i32_0 : i32, i32
  }
  func.func @transform_4(%arg0: i32) -> (i32, i32) {
    %c0_i32 = arith.constant 0 : i32
    %c0_i32_0 = arith.constant 0 : i32
    %c0_i32_1 = arith.constant 0 : i32
    return %c0_i32, %c0_i32_0 : i32, i32
  }
  func.func @transform_5(%arg0: i32) -> (i32, i32) {
    %c0_i32 = arith.constant 0 : i32
    %c0_i32_0 = arith.constant 0 : i32
    %c0_i32_1 = arith.constant 0 : i32
    return %c0_i32, %c0_i32_0 : i32, i32
  }
  func.func @transform_6(%arg0: i32) -> (i32, i32) {
    %c0_i32 = arith.constant 0 : i32
    %c0_i32_0 = arith.constant 0 : i32
    %c0_i32_1 = arith.constant 0 : i32
    return %c0_i32, %c0_i32_0 : i32, i32
  }
  func.func @transform_7(%arg0: i32) -> (i32, i32) {
    %c0_i32 = arith.constant 0 : i32
    %c0_i32_0 = arith.constant 0 : i32
    return %arg0, %c0_i32 : i32, i32
  }
}

module attributes {stable_mosaic.version = 11 : i64} {
  func.func @kernel(%arg0: i32, %arg1: memref<16x1024xf32, #tpu.memory_space<vmem>>, %arg2: memref<1024x128xbf16, #tpu.memory_space<vmem>>, %arg3: memref<1x128xf32, #tpu.memory_space<vmem>>, %arg4: memref<128x128xbf16, #tpu.memory_space<vmem>>, %arg5: memref<1x128xf32, #tpu.memory_space<vmem>>, %arg6: memref<128x128xbf16, #tpu.memory_space<vmem>>, %arg7: memref<1x128xf32, #tpu.memory_space<vmem>>, %arg8: memref<16x128xbf16, #tpu.memory_space<vmem>>) attributes {dimension_semantics = [#tpu.dimension_semantics<parallel>], iteration_bounds = array<i64: 1>, scalar_prefetch = 0 : i64, scratch_operands = 0 : i64, tpu.core_type = #tpu.core_type<tc>, window_params = [{transform_indices = @transform_0, window_bounds = array<i64: 16, 1024>}, {pipeline_mode = #tpu.pipeline_mode<synchronous>, transform_indices = @transform_1, window_bounds = array<i64: 1024, 128>}, {pipeline_mode = #tpu.pipeline_mode<synchronous>, transform_indices = @transform_2, window_bounds = array<i64: 1, 128>}, {pipeline_mode = #tpu.pipeline_mode<synchronous>, transform_indices = @transform_3, window_bounds = array<i64: 128, 128>}, {pipeline_mode = #tpu.pipeline_mode<synchronous>, transform_indices = @transform_4, window_bounds = array<i64: 1, 128>}, {pipeline_mode = #tpu.pipeline_mode<synchronous>, transform_indices = @transform_5, window_bounds = array<i64: 128, 128>}, {pipeline_mode = #tpu.pipeline_mode<synchronous>, transform_indices = @transform_6, window_bounds = array<i64: 1, 128>}, {transform_indices = @transform_7, window_bounds = array<i64: 16, 128>}]} {
    %c0 = arith.constant 0 : index
    %c0_0 = arith.constant 0 : index
    %0 = vector.load %arg1[%c0, %c0_0] : memref<16x1024xf32, #tpu.memory_space<vmem>>, vector<16x1024xf32>
    %1 = arith.truncf %0 : vector<16x1024xf32> to vector<16x1024xbf16>
    %c0_1 = arith.constant 0 : index
    %c0_2 = arith.constant 0 : index
    %2 = vector.load %arg2[%c0_1, %c0_2] : memref<1024x128xbf16, #tpu.memory_space<vmem>>, vector<1024x128xbf16>
    %cst = arith.constant dense<0.000000e+00> : vector<16x128xf32>
    %3 = tpu.matmul %1, %2, %cst {dimension_numbers = #tpu.dot_dimension_numbers<[1], [0], [0], [1], [0, 0, 1, 1], [], []>} : vector<16x1024xbf16>, vector<1024x128xbf16>, vector<16x128xf32> -> vector<16x128xf32>
    %c0_3 = arith.constant 0 : index
    %c0_4 = arith.constant 0 : index
    %4 = vector.load %arg3[%c0_3, %c0_4] : memref<1x128xf32, #tpu.memory_space<vmem>>, vector<1x128xf32>
    %5 = vector.broadcast %4 : vector<1x128xf32> to vector<16x128xf32>
    %6 = arith.addf %3, %5 : vector<16x128xf32>
    %7 = arith.truncf %6 : vector<16x128xf32> to vector<16x128xbf16>
    %cst_5 = arith.constant 0.000000e+00 : bf16
    %8 = vector.broadcast %cst_5 : bf16 to vector<16x128xbf16>
    %9 = arith.maximumf %7, %8 : vector<16x128xbf16>
    %c0_6 = arith.constant 0 : index
    %c0_7 = arith.constant 0 : index
    %10 = vector.load %arg4[%c0_6, %c0_7] : memref<128x128xbf16, #tpu.memory_space<vmem>>, vector<128x128xbf16>
    %cst_8 = arith.constant dense<0.000000e+00> : vector<16x128xf32>
    %11 = tpu.matmul %9, %10, %cst_8 {dimension_numbers = #tpu.dot_dimension_numbers<[1], [0], [0], [1], [0, 0, 1, 1], [], []>} : vector<16x128xbf16>, vector<128x128xbf16>, vector<16x128xf32> -> vector<16x128xf32>
    %c0_9 = arith.constant 0 : index
    %c0_10 = arith.constant 0 : index
    %12 = vector.load %arg5[%c0_9, %c0_10] : memref<1x128xf32, #tpu.memory_space<vmem>>, vector<1x128xf32>
    %13 = vector.broadcast %12 : vector<1x128xf32> to vector<16x128xf32>
    %14 = arith.addf %11, %13 : vector<16x128xf32>
    %15 = arith.truncf %14 : vector<16x128xf32> to vector<16x128xbf16>
    %cst_11 = arith.constant 0.000000e+00 : bf16
    %16 = vector.broadcast %cst_11 : bf16 to vector<16x128xbf16>
    %17 = arith.maximumf %15, %16 : vector<16x128xbf16>
    %c0_12 = arith.constant 0 : index
    %c0_13 = arith.constant 0 : index
    %18 = vector.load %arg6[%c0_12, %c0_13] : memref<128x128xbf16, #tpu.memory_space<vmem>>, vector<128x128xbf16>
    %cst_14 = arith.constant dense<0.000000e+00> : vector<16x128xf32>
    %19 = tpu.matmul %17, %18, %cst_14 {dimension_numbers = #tpu.dot_dimension_numbers<[1], [0], [0], [1], [0, 0, 1, 1], [], []>} : vector<16x128xbf16>, vector<128x128xbf16>, vector<16x128xf32> -> vector<16x128xf32>
    %c0_15 = arith.constant 0 : index
    %c0_16 = arith.constant 0 : index
    %20 = vector.load %arg7[%c0_15, %c0_16] : memref<1x128xf32, #tpu.memory_space<vmem>>, vector<1x128xf32>
    %21 = vector.broadcast %20 : vector<1x128xf32> to vector<16x128xf32>
    %22 = arith.addf %19, %21 : vector<16x128xf32>
    %23 = arith.truncf %22 : vector<16x128xf32> to vector<16x128xbf16>
    %c0_17 = arith.constant 0 : index
    %c0_18 = arith.constant 0 : index
    %24 = vector.load %arg8[%c0_17, %c0_18] : memref<16x128xbf16, #tpu.memory_space<vmem>>, vector<16x128xbf16>
    tpu.vector_store %arg8[%c0_17, %c0_18], %23 {strides = array<i32>} : memref<16x128xbf16, #tpu.memory_space<vmem>>, vector<16x128xbf16>,
    return
  }
  func.func @transform_0(%arg0: i32) -> (i32, i32) {
    %c0_i32 = arith.constant 0 : i32
    %c0_i32_0 = arith.constant 0 : i32
    return %arg0, %c0_i32 : i32, i32
  }
  func.func @transform_1(%arg0: i32) -> (i32, i32) {
    %c0_i32 = arith.constant 0 : i32
    %c0_i32_0 = arith.constant 0 : i32
    %c0_i32_1 = arith.constant 0 : i32
    return %c0_i32, %c0_i32_0 : i32, i32
  }
  func.func @transform_2(%arg0: i32) -> (i32, i32) {
    %c0_i32 = arith.constant 0 : i32
    %c0_i32_0 = arith.constant 0 : i32
    %c0_i32_1 = arith.constant 0 : i32
    return %c0_i32, %c0_i32_0 : i32, i32
  }
  func.func @transform_3(%arg0: i32) -> (i32, i32) {
    %c0_i32 = arith.constant 0 : i32
    %c0_i32_0 = arith.constant 0 : i32
    %c0_i32_1 = arith.constant 0 : i32
    return %c0_i32, %c0_i32_0 : i32, i32
  }
  func.func @transform_4(%arg0: i32) -> (i32, i32) {
    %c0_i32 = arith.constant 0 : i32
    %c0_i32_0 = arith.constant 0 : i32
    %c0_i32_1 = arith.constant 0 : i32
    return %c0_i32, %c0_i32_0 : i32, i32
  }
  func.func @transform_5(%arg0: i32) -> (i32, i32) {
    %c0_i32 = arith.constant 0 : i32
    %c0_i32_0 = arith.constant 0 : i32
    %c0_i32_1 = arith.constant 0 : i32
    return %c0_i32, %c0_i32_0 : i32, i32
  }
  func.func @transform_6(%arg0: i32) -> (i32, i32) {
    %c0_i32 = arith.constant 0 : i32
    %c0_i32_0 = arith.constant 0 : i32
    %c0_i32_1 = arith.constant 0 : i32
    return %c0_i32, %c0_i32_0 : i32, i32
  }
  func.func @transform_7(%arg0: i32) -> (i32, i32) {
    %c0_i32 = arith.constant 0 : i32
    %c0_i32_0 = arith.constant 0 : i32
    return %arg0, %c0_i32 : i32, i32
  }
}

</mosaic_0001>

<bundles_post_ra>
// kernel: tpu_custom_call.1
= control target key start
LH: loop header
LB: loop body
LE: loop exit
PB: predicated region body
PF: predicated region fallthrough
CT: control target
= control target key end

     0   :  { %12 = vsyncpa [#allocation3], 0  ;;  %s1645_s0 = inlined_call_operand.hbm [shape: f32[16,1024], index: 0, kind: input, shape index: {}]   ;;  %s1646_s1 = inlined_call_operand.hbm [shape: bf16[1024,128], index: 1, kind: input, shape index: {}]   ;;  %s1647_s2 = inlined_call_operand.vmem [shape: f32[1,128], index: 2, kind: input, shape index: {}]   ;;  %s1648_s3 = inlined_call_operand.hbm [shape: bf16[128,128], index: 3, kind: input, shape index: {}]   ;;  %s1649_s4 = inlined_call_operand.vmem [shape: f32[1,128], index: 4, kind: input, shape index: {}]   ;;  %s1650_s5 = inlined_call_operand.hbm [shape: bf16[128,128], index: 5, kind: input, shape index: {}]   ;;  %s1651_s6 = inlined_call_operand.vmem [shape: f32[1,128], index: 6, kind: input, shape index: {}]   ;;  %s1652_s7 = inlined_call_operand.hbm [shape: bf16[16,128], index: 7, kind: output, shape index: {}]  }
   0x1   :  { %13 = vsyncpa [#allocation6], 0 }
   0x2   :  { %14 = vsyncpa [#allocation9], 0 }
   0x3   :  { %15 = vsyncpa [#allocation4], 0  ;;  %s1494_s24 = smov [#allocation5]   ;;  %s1376_s28 = scalar_lea.hbm %s1646_s1, 8192 }
   0x4   :  { %s33_s25 = sshll.u32 %s1494_s24, 4  ;;  %p1377_p0 = scmp.ne.s32.totalorder %s1646_s1, %s1376_s28  ;;  %s34_s25 = int_to_ptr.vmem [resolvable:$true] %s33_s25 }
   0x5   :  { %p1380_p1 = scmp.lt.u32.totalorder %s1376_s28, %s1646_s1 }
   0x7   :  { %p1382_p2 = pnand %p1380_p1, %p1377_p0 }
   0x9   :  { %1385 = shalt.err (!%p1382_p2)
}
   0xa   :  { %s1386_s10 = scalar_lea.vmem %s34_s25, 8192  ;;  %p1391_p4 = scmp.lt.s32.totalorder %s34_s25, %s34_s25 }
   0xb   :  { %p1387_p3 = scmp.ne.s32.totalorder %s34_s25, %s1386_s10  ;;  %p1392_p5 = scmp.lt.s32.totalorder %s1386_s10, %s1386_s10 }
   0xd   :  { %p1393_p6 = por %p1392_p5, %p1391_p4 }
   0xf   :  { %p1394_p7 = pnand %p1393_p6, %p1387_p3 }
  0x11   :  { %1397 = shalt.err (!%p1394_p7)
}
  0x12   :  { %s1495_s11 = smov 64   ;;  %s1496_s12 = smov 4  }
  0x13   :  { %39 = dma.hbm_to_vmem [thread:$0]  %s1646_s1, 8192, %s34_s25, [#allocation6], %s1495_s11, %s1495_s11, %s1496_s12  }
  0x14   :  { %s1497_s15 = smov [#allocation2]   ;;  %s1398_s19 = scalar_lea.hbm %s1645_s0, 2048 }
  0x15   :  { %s21_s16 = sshll.u32 %s1497_s15, 4  ;;  %p1399_p8 = scmp.ne.s32.totalorder %s1645_s0, %s1398_s19  ;;  %s22_s16 = int_to_ptr.vmem [resolvable:$true] %s21_s16 }
  0x16   :  { %p1402_p9 = scmp.lt.u32.totalorder %s1398_s19, %s1645_s0 }
  0x18   :  { %p1404_p10 = pnand %p1402_p9, %p1399_p8 }
  0x1a   :  { %1407 = shalt.err (!%p1404_p10)
}
  0x1b   :  { %s1408_s24 = scalar_lea.vmem %s22_s16, 2048  ;;  %p1413_p12 = scmp.lt.s32.totalorder %s22_s16, %s22_s16 }
  0x1c   :  { %p1409_p11 = scmp.ne.s32.totalorder %s22_s16, %s1408_s24  ;;  %p1414_p13 = scmp.lt.s32.totalorder %s1408_s24, %s1408_s24 }
  0x1e   :  { %p1415_p0 = por %p1414_p13, %p1413_p12 }
  0x20   :  { %p1416_p1 = pnand %p1415_p0, %p1409_p11 }
  0x22   :  { %1419 = shalt.err (!%p1416_p1)
}
  0x23   :  { %s1498_s1 = smov 1024   ;;  %s1499_s27 = smov [#allocation7]  }
  0x24   :  { %27 = dma.hbm_to_vmem [thread:$0]  %s1645_s0, 2048, %s22_s16, [#allocation3], %s1498_s1, %s1498_s1, %s1495_s11  }
  0x25   :  { %s47_s28 = sshll.u32 %s1499_s27, 4  ;;  %s1500_s29 = smov [#allocation8]   ;;  %s48_s28 = int_to_ptr.vmem [resolvable:$true] %s47_s28 }
  0x26   :  { %s61_s30 = sshll.u32 %s1500_s29, 4  ;;  %s1420_s10 = scalar_lea.hbm %s1648_s3, 1024  ;;  %s62_s30 = int_to_ptr.vmem [resolvable:$true] %s61_s30 }
  0x27   :  { %p1421_p2 = scmp.ne.s32.totalorder %s1648_s3, %s1420_s10  ;;  %p1424_p3 = scmp.lt.u32.totalorder %s1420_s10, %s1648_s3 }
  0x29   :  { %p1426_p4 = pnand %p1424_p3, %p1421_p2 }
  0x2b   :  { %1429 = shalt.err (!%p1426_p4)
}
  0x2c   :  { %s1430_s0 = scalar_lea.vmem %s48_s28, 1024  ;;  %p1435_p6 = scmp.lt.s32.totalorder %s48_s28, %s48_s28 }
  0x2d   :  { %p1431_p5 = scmp.ne.s32.totalorder %s48_s28, %s1430_s0  ;;  %p1436_p7 = scmp.lt.s32.totalorder %s1430_s0, %s1430_s0 }
  0x2f   :  { %p1437_p8 = por %p1436_p7, %p1435_p6 }
  0x31   :  { %p1438_p9 = pnand %p1437_p8, %p1431_p5 }
  0x33   :  { %1441 = shalt.err (!%p1438_p9)
}
  0x34   :  { %53 = dma.hbm_to_vmem [thread:$0]  %s1648_s3, 1024, %s48_s28, [#allocation6], %s1495_s11, %s1495_s11, %s1496_s12  }
  0x35   :  { %s1442_s21 = scalar_lea.hbm %s1650_s5, 1024 }
  0x36   :  { %p1443_p10 = scmp.ne.s32.totalorder %s1650_s5, %s1442_s21  ;;  %p1446_p11 = scmp.lt.u32.totalorder %s1442_s21, %s1650_s5 }
  0x38   :  { %p1448_p12 = pnand %p1446_p11, %p1443_p10 }
  0x3a   :  { %1451 = shalt.err (!%p1448_p12)
}
  0x3b   :  { %s1452_s25 = scalar_lea.vmem %s62_s30, 1024  ;;  %p1457_p0 = scmp.lt.s32.totalorder %s62_s30, %s62_s30 }
  0x3c   :  { %p1453_p13 = scmp.ne.s32.totalorder %s62_s30, %s1452_s25  ;;  %p1458_p1 = scmp.lt.s32.totalorder %s1452_s25, %s1452_s25 }
  0x3e   :  { %p1459_p2 = por %p1458_p1, %p1457_p0 }
  0x40   :  { %p1460_p3 = pnand %p1459_p2, %p1453_p13 }
  0x42   :  { %1463 = shalt.err (!%p1460_p3)
}
  0x43   :  { %67 = dma.hbm_to_vmem [thread:$0]  %s1650_s5, 1024, %s62_s30, [#allocation9], %s1495_s11, %s1495_s11, %s1496_s12  }
  0x44   :  { %1486 = dma.done.wait [#allocation3], 2048  }
  0x45   :  { %1487 = vsyncadd [#allocation3], 4294965248 }
  0x46   :  { %1488 = dma.done.wait [#allocation6], 9216  }
  0x47   :  { %1489 = vsyncadd [#allocation6], 4294958080 }
  0x48   :  { %1490 = dma.done.wait [#allocation9], 1024  }
  0x49   :  { %1491 = vsyncadd [#allocation9], 4294966272  ;;  %v1296_v0 = vld [vmem:[#allocation5 + $0x40] sm:$0xff]   ;;  %v1300_v4 = vld [vmem:[#allocation5 + $0x48] sm:$0xff]   ;;  %vm1502_vm0 = vmmov 0   ;;  %s1504_s8 = smov [#allocation10]  }
  0x4a   :  { %v1297_v1 = vld [vmem:[#allocation5 + $0xc0] sm:$0xff]   ;;  %1139 = vmatprep.subr.bf16.mxu0 %v1296_v0  ;;  %v1301_v5 = vld [vmem:[#allocation5 + $0xc8] sm:$0xff]   ;;  %v1304_v8 = vld [vmem:[#allocation5 + $0x50] sm:$0xff]   ;;  %s1033_s9 = sshll.u32 %s1504_s8, 4  ;;  %s1034_s9 = int_to_ptr.vmem [resolvable:$true] %s1033_s9 }
  0x4b   :  { %v1298_v2 = vld [vmem:[#allocation5] sm:$0xff]   ;;  %1161 = vmatprep.subr.bf16.mxu1 %v1297_v1  ;;  %v1302_v6 = vld [vmem:[#allocation5 + $0x8] sm:$0xff]   ;;  %v1305_v9 = vld [vmem:[#allocation5 + $0xd0] sm:$0xff]   ;;  %p1469_p5 = scmp.lt.s32.totalorder %s1034_s9, %s1034_s9 }
  0x4c   :  { %v1299_v3 = vld [vmem:[#allocation5 + $0x80] sm:$0xff]   ;;  %1140 = vmatpush3.bf16.msra.mxu0 %v1298_v2  ;;  %v1303_v7 = vld [vmem:[#allocation5 + $0x88] sm:$0xff]   ;;  %v1306_v10 = vld [vmem:[#allocation5 + $0x10] sm:$0xff]  }
  0x4d   :  { %1162 = vmatpush3.bf16.msra.mxu1 %v1299_v3  ;;  %1141 = vmatprep.subr.bf16.mxu0 %v1300_v4  ;;  %v1307_v11 = vld [vmem:[#allocation5 + $0x90] sm:$0xff]   ;;  %v1308_v12 = vld [vmem:[#allocation5 + $0x58] sm:$0xff]   ;;  %v1312_v16 = vld [vmem:[#allocation5 + $0x60] sm:$0xff]  }
  0x4e   :  { %1163 = vmatprep.subr.bf16.mxu1 %v1301_v5  ;;  %v1309_v13 = vld [vmem:[#allocation5 + $0xd8] sm:$0xff]   ;;  %v1313_v17 = vld [vmem:[#allocation5 + $0xe0] sm:$0xff]   ;;  %v1316_v20 = vld [vmem:[#allocation5 + $0x68] sm:$0xff]  }
  0x4f   :  { %v1310_v14 = vld [vmem:[#allocation5 + $0x18] sm:$0xff]   ;;  %v1314_v18 = vld [vmem:[#allocation5 + $0x20] sm:$0xff]   ;;  %v1317_v21 = vld [vmem:[#allocation5 + $0xe8] sm:$0xff]  }
  0x50   :  { %1142 = vmatpush3.bf16.msra.mxu0 %v1302_v6  ;;  %v1311_v15 = vld [vmem:[#allocation5 + $0x98] sm:$0xff]   ;;  %v1315_v19 = vld [vmem:[#allocation5 + $0xa0] sm:$0xff]   ;;  %v1318_v22 = vld [vmem:[#allocation5 + $0x28] sm:$0xff]  }
  0x51   :  { %1164 = vmatpush3.bf16.msra.mxu1 %v1303_v7  ;;  %1143 = vmatprep.subr.bf16.mxu0 %v1304_v8  ;;  %v1319_v23 = vld [vmem:[#allocation5 + $0xa8] sm:$0xff]   ;;  %v1320_v24 = vld [vmem:[#allocation5 + $0x70] sm:$0xff]   ;;  %v1324_v28 = vld [vmem:[#allocation5 + $0x78] sm:$0xff]  }
  0x52   :  { %1165 = vmatprep.subr.bf16.mxu1 %v1305_v9  ;;  %v1321_v25 = vld [vmem:[#allocation5 + $0xf0] sm:$0xff]   ;;  %v1325_v29 = vld [vmem:[#allocation5 + $0xf8] sm:$0xff]   ;;  %v84_v32 = vld [vmem:[#allocation2 + $0x8] sm:$0xff] }
  0x53   :  { %v1322_v26 = vld [vmem:[#allocation5 + $0x30] sm:$0xff]   ;;  %v1326_v30 = vld [vmem:[#allocation5 + $0x38] sm:$0xff]   ;;  %v92_v33 = vld [vmem:[#allocation2 + $0x48] sm:$0xff] }
  0x54   :  { %1144 = vmatpush3.bf16.msra.mxu0 %v1306_v10  ;;  %v1323_v27 = vld [vmem:[#allocation5 + $0xb0] sm:$0xff]   ;;  %v1327_v31 = vld [vmem:[#allocation5 + $0xb8] sm:$0xff]   ;;  %v100_v35 = vpack.c.bf16 %v92_v33, %v84_v32  ;;  %v83_v37 = vld [vmem:[#allocation2] sm:$0xff] }
  0x55   :  { %1166 = vmatpush3.bf16.msra.mxu1 %v1307_v11  ;;  %1145 = vmatprep.subr.bf16.mxu0 %v1308_v12  ;;  %v86_v34 = vld [vmem:[#allocation2 + $0x18] sm:$0xff]  ;;  %v91_v38 = vld [vmem:[#allocation2 + $0x40] sm:$0xff]  ;;  %v85_v41 = vld [vmem:[#allocation2 + $0x10] sm:$0xff] }
  0x56   :  { %1167 = vmatprep.subr.bf16.mxu1 %v1309_v13  ;;  %v94_v36 = vld [vmem:[#allocation2 + $0x58] sm:$0xff]  ;;  %v99_v40 = vpack.c.bf16 %v91_v38, %v83_v37  ;;  %v93_v42 = vld [vmem:[#allocation2 + $0x50] sm:$0xff]  ;;  %658 = vmatprep.mubr.bf16.mxu0 %v100_v35  ;;  %v1328_v44 = vld [vmem:[#allocation5 + $0x140] sm:$0xff]  }
  0x57   :  { %v102_v39 = vpack.c.bf16 %v94_v36, %v86_v34  ;;  %v101_v43 = vpack.c.bf16 %v93_v42, %v85_v41  ;;  %v1329_v45 = vld [vmem:[#allocation5 + $0x1c0] sm:$0xff]   ;;  %v1332_v48 = vld [vmem:[#allocation5 + $0x148] sm:$0xff]   ;;  %v1336_v52 = vld [vmem:[#allocation5 + $0x150] sm:$0xff]  }
  0x58   :  { %1146 = vmatpush3.bf16.msra.mxu0 %v1310_v14  ;;  %v1330_v46 = vld [vmem:[#allocation5 + $0x100] sm:$0xff]   ;;  %v1333_v49 = vld [vmem:[#allocation5 + $0x1c8] sm:$0xff]   ;;  %v1337_v53 = vld [vmem:[#allocation5 + $0x1d0] sm:$0xff]  }
  0x59   :  { %1168 = vmatpush3.bf16.msra.mxu1 %v1311_v15  ;;  %1147 = vmatprep.subr.bf16.mxu0 %v1312_v16  ;;  %v1331_v47 = vld [vmem:[#allocation5 + $0x180] sm:$0xff]   ;;  %v1334_v50 = vld [vmem:[#allocation5 + $0x108] sm:$0xff]   ;;  %v1338_v54 = vld [vmem:[#allocation5 + $0x110] sm:$0xff]  }
  0x5a   :  { %1169 = vmatprep.subr.bf16.mxu1 %v1313_v17  ;;  %699 = vmatprep.mubr.bf16.mxu1 %v102_v39  ;;  %v1335_v51 = vld [vmem:[#allocation5 + $0x188] sm:$0xff]   ;;  %v1339_v55 = vld [vmem:[#allocation5 + $0x190] sm:$0xff]   ;;  %v1340_v56 = vld [vmem:[#allocation5 + $0x158] sm:$0xff]  }
  0x5b   :  { %v1341_v57 = vld [vmem:[#allocation5 + $0x1d8] sm:$0xff]   ;;  %v1344_v60 = vld [vmem:[#allocation5 + $0x160] sm:$0xff]   ;;  %v1348_v0 = vld [vmem:[#allocation5 + $0x168] sm:$0xff]  }
  0x5c   :  { %1148 = vmatpush3.bf16.msra.mxu0 %v1314_v18  ;;  %v1342_v58 = vld [vmem:[#allocation5 + $0x118] sm:$0xff]   ;;  %v1345_v61 = vld [vmem:[#allocation5 + $0x1e0] sm:$0xff]   ;;  %v1349_v1 = vld [vmem:[#allocation5 + $0x1e8] sm:$0xff]  }
  0x5d   :  { %1170 = vmatpush3.bf16.msra.mxu1 %v1315_v19  ;;  %1149 = vmatprep.subr.bf16.mxu0 %v1316_v20  ;;  %v1343_v59 = vld [vmem:[#allocation5 + $0x198] sm:$0xff]   ;;  %v1346_v62 = vld [vmem:[#allocation5 + $0x120] sm:$0xff]   ;;  %v1350_v2 = vld [vmem:[#allocation5 + $0x128] sm:$0xff]  }
  0x5e   :  { %1171 = vmatprep.subr.bf16.mxu1 %v1317_v21  ;;  %v1347_v63 = vld [vmem:[#allocation5 + $0x1a0] sm:$0xff]   ;;  %v1351_v3 = vld [vmem:[#allocation5 + $0x1a8] sm:$0xff]   ;;  %v1352_v4 = vld [vmem:[#allocation5 + $0x170] sm:$0xff]  }
  0x5f   :  { %v1353_v5 = vld [vmem:[#allocation5 + $0x1f0] sm:$0xff]   ;;  %v1356_v8 = vld [vmem:[#allocation5 + $0x178] sm:$0xff]   ;;  %v88_v12 = vld [vmem:[#allocation2 + $0x28] sm:$0xff] }
  0x60   :  { %1150 = vmatpush3.bf16.msra.mxu0 %v1318_v22  ;;  %v1354_v6 = vld [vmem:[#allocation5 + $0x130] sm:$0xff]   ;;  %v1357_v9 = vld [vmem:[#allocation5 + $0x1f8] sm:$0xff]   ;;  %v96_v13 = vld [vmem:[#allocation2 + $0x68] sm:$0xff] }
  0x61   :  { %1172 = vmatpush3.bf16.msra.mxu1 %v1319_v23  ;;  %1151 = vmatprep.subr.bf16.mxu0 %v1320_v24  ;;  %v1355_v7 = vld [vmem:[#allocation5 + $0x1b0] sm:$0xff]   ;;  %v1358_v10 = vld [vmem:[#allocation5 + $0x138] sm:$0xff]   ;;  %v104_v16 = vpack.c.bf16 %v96_v13, %v88_v12  ;;  %v87_v18 = vld [vmem:[#allocation2 + $0x20] sm:$0xff] }
  0x62   :  { %1173 = vmatprep.subr.bf16.mxu1 %v1321_v25  ;;  %v1359_v11 = vld [vmem:[#allocation5 + $0x1b8] sm:$0xff]   ;;  %v95_v19 = vld [vmem:[#allocation2 + $0x60] sm:$0xff]  ;;  %v89_v20 = vld [vmem:[#allocation2 + $0x30] sm:$0xff]  ;;  %v1501_v25 = vmov 0.0  }
  0x63   :  { %v90_v14 = vld [vmem:[#allocation2 + $0x38] sm:$0xff]  ;;  %v103_v21 = vpack.c.bf16 %v95_v19, %v87_v18  ;;  %v97_v22 = vld [vmem:[#allocation2 + $0x70] sm:$0xff]  ;;  %v1360_v24 = vld [vmem:[#allocation7] sm:$0xff]  }
  0x64   :  { %1152 = vmatpush3.bf16.msra.mxu0 %v1322_v26  ;;  %v98_v15 = vld [vmem:[#allocation2 + $0x78] sm:$0xff]  ;;  %v105_v23 = vpack.c.bf16 %v97_v22, %v89_v20  ;;  %v1361_v26 = vld [vmem:[#allocation7 + $0x8] sm:$0xff]   ;;  %v1368_v33 = vld [vmem:[#allocation8] sm:$0xff]  }
  0x65   :  { %1174 = vmatpush3.bf16.msra.mxu1 %v1323_v27  ;;  %1153 = vmatprep.subr.bf16.mxu0 %v1324_v28  ;;  %v106_v17 = vpack.c.bf16 %v98_v15, %v90_v14  ;;  %v1362_v27 = vld [vmem:[#allocation7 + $0x10] sm:$0xff]   ;;  %v1363_v28 = vld [vmem:[#allocation7 + $0x18] sm:$0xff]   ;;  %v1369_v34 = vld [vmem:[#allocation8 + $0x8] sm:$0xff]  }
  0x66   :  { %1175 = vmatprep.subr.bf16.mxu1 %v1325_v29  ;;  %v1364_v29 = vld [vmem:[#allocation7 + $0x20] sm:$0xff]   ;;  %v1367_v32 = vld [vmem:[#allocation7 + $0x38] sm:$0xff]   ;;  %v1370_v35 = vld [vmem:[#allocation8 + $0x10] sm:$0xff]  }
  0x67   :  { %v1371_v36 = vld [vmem:[#allocation8 + $0x18] sm:$0xff]   ;;  %v1372_v37 = vld [vmem:[#allocation8 + $0x20] sm:$0xff]   ;;  %v1373_v38 = vld [vmem:[#allocation8 + $0x28] sm:$0xff]  }
  0x68   :  { %1154 = vmatpush3.bf16.msra.mxu0 %v1326_v30  ;;  %v1365_v30 = vld [vmem:[#allocation7 + $0x28] sm:$0xff]   ;;  %v1047_v41 = vld [vmem:[%s1647_s2] ss:$0 sm:$0xff]  ;;  %v1375_v12 = vld [vmem:[#allocation8 + $0x38] sm:$0xff]  }
  0x69   :  { %1176 = vmatpush3.bf16.msra.mxu1 %v1327_v31  ;;  %1183 = vmatprep.subr.bf16.mxu0 %v1328_v44  ;;  %v1366_v31 = vld [vmem:[#allocation7 + $0x30] sm:$0xff]   ;;  %v1112_v13 = vld [vmem:[%s1649_s4] ss:$0 sm:$0xff]  ;;  %s1464_s4 = scalar_lea.vmem %s1034_s9, 128 }
  0x6a   :  { %1205 = vmatprep.subr.bf16.mxu1 %v1329_v45  ;;  %v1121_v22 = vld [vmem:[%s1651_s6] ss:$0 sm:$0xff]  ;;  %p1465_p4 = scmp.ne.s32.totalorder %s1034_s9, %s1464_s4  ;;  %p1470_p6 = scmp.lt.s32.totalorder %s1464_s4, %s1464_s4 }
  0x6b   :  { %659 = vmatmul.mubr.bf16.vlgmr.msra.gmra.mrb[0].mxu0 %v99_v40 }
  0x6c   :  { %700 = vmatmul.mubr.bf16.vlgmr.msra.gmra.mrb[0].mxu1 %v101_v43  ;;  %1184 = vmatpush3.bf16.msra.mxu0 %v1330_v46  ;;  %p1471_p7 = por %p1470_p6, %p1469_p5 }
  0x6d   :  { %1206 = vmatpush3.bf16.msra.mxu1 %v1331_v47  ;;  %1185 = vmatprep.subr.bf16.mxu0 %v1332_v48 }
  0x6e   :  { %1207 = vmatprep.subr.bf16.mxu1 %v1333_v49  ;;  %740 = vmatprep.mubr.bf16.mxu0 %v104_v16  ;;  %p1472_p8 = pnand %p1471_p7, %p1465_p4 }
  0x6f   :  { %781 = vmatprep.mubr.bf16.mxu1 %v106_v17 }
  0x70   :  { %1186 = vmatpush3.bf16.msra.mxu0 %v1334_v50 }
  0x71   :  { %1208 = vmatpush3.bf16.msra.mxu1 %v1335_v51  ;;  %1187 = vmatprep.subr.bf16.mxu0 %v1336_v52 }
  0x72   :  { %1209 = vmatprep.subr.bf16.mxu1 %v1337_v53 }
  0x74   :  { %1188 = vmatpush3.bf16.msra.mxu0 %v1338_v54 }
  0x75   :  { %1210 = vmatpush3.bf16.msra.mxu1 %v1339_v55  ;;  %1189 = vmatprep.subr.bf16.mxu0 %v1340_v56 }
  0x76   :  { %1211 = vmatprep.subr.bf16.mxu1 %v1341_v57 }
  0x78   :  { %1190 = vmatpush3.bf16.msra.mxu0 %v1342_v58 }
  0x79   :  { %1212 = vmatpush3.bf16.msra.mxu1 %v1343_v59  ;;  %1191 = vmatprep.subr.bf16.mxu0 %v1344_v60 }
  0x7a   :  { %1213 = vmatprep.subr.bf16.mxu1 %v1345_v61 }
  0x7c   :  { %1192 = vmatpush3.bf16.msra.mxu0 %v1346_v62 }
  0x7d   :  { %1214 = vmatpush3.bf16.msra.mxu1 %v1347_v63  ;;  %1193 = vmatprep.subr.bf16.mxu0 %v1348_v0 }
  0x7e   :  { %1215 = vmatprep.subr.bf16.mxu1 %v1349_v1 }
  0x80   :  { %1194 = vmatpush3.bf16.msra.mxu0 %v1350_v2 }
  0x81   :  { %1216 = vmatpush3.bf16.msra.mxu1 %v1351_v3  ;;  %1195 = vmatprep.subr.bf16.mxu0 %v1352_v4 }
  0x82   :  { %1217 = vmatprep.subr.bf16.mxu1 %v1353_v5 }
  0x84   :  { %1196 = vmatpush3.bf16.msra.mxu0 %v1354_v6 }
  0x85   :  { %1218 = vmatpush3.bf16.msra.mxu1 %v1355_v7  ;;  %1197 = vmatprep.subr.bf16.mxu0 %v1356_v8 }
  0x86   :  { %1219 = vmatprep.subr.bf16.mxu1 %v1357_v9  ;;  %v1503_v9 = vmov 0  }
  0x88   :  { %1198 = vmatpush3.bf16.msra.mxu0 %v1358_v10 }
  0x89   :  { %1220 = vmatpush3.bf16.msra.mxu1 %v1359_v11  ;;  %1245 = vmatprep.subr.bf16.mxu0 %v1501_v25  ;;  %v1374_v11 = vld [vmem:[#allocation8 + $0x30] sm:$0xff]  }
  0x8a   :  { %1265 = vmatprep.subr.bf16.mxu1 %v1501_v25 }
  0x8b   :  { %741 = vmatmul.mubr.bf16.vlgmr.msra.gmra.mrb[4].mxu0 %v103_v21 }
  0x8c   :  { %782 = vmatmul.mubr.bf16.vlgmr.msra.gmra.mrb[4].mxu1 %v105_v23  ;;  %1246 = vmatpush3.bf16.msra.mxu0 %v1360_v24 }
  0x8d   :  { %1247 = vmatprep.subr.bf16.mxu0 %v1501_v25  ;;  %1261 = vmatprep.mubr.msk.bf16.mxu0 %vm1502_vm0, %v1501_v25 }
  0x8e   :  { %1281 = vmatprep.mubr.msk.bf16.mxu1 %vm1502_vm0, %v1501_v25  ;;  %1266 = vmatpush3.bf16.msra.mxu1 %v1368_v33 }
  0x8f   :  { %1267 = vmatprep.subr.bf16.mxu1 %v1501_v25 }
  0x90   :  { %1248 = vmatpush3.bf16.msra.mxu0 %v1361_v26 }
  0x91   :  { %1249 = vmatprep.subr.bf16.mxu0 %v1501_v25 }
  0x92   :  { %1268 = vmatpush3.bf16.msra.mxu1 %v1369_v34 }
  0x93   :  { %1269 = vmatprep.subr.bf16.mxu1 %v1501_v25 }
  0x94   :  { %1250 = vmatpush3.bf16.msra.mxu0 %v1362_v27 }
  0x95   :  { %1251 = vmatprep.subr.bf16.mxu0 %v1501_v25 }
  0x96   :  { %1270 = vmatpush3.bf16.msra.mxu1 %v1370_v35 }
  0x97   :  { %1271 = vmatprep.subr.bf16.mxu1 %v1501_v25 }
  0x98   :  { %1252 = vmatpush3.bf16.msra.mxu0 %v1363_v28 }
  0x99   :  { %1253 = vmatprep.subr.bf16.mxu0 %v1501_v25 }
  0x9a   :  { %1272 = vmatpush3.bf16.msra.mxu1 %v1371_v36 }
  0x9b   :  { %1273 = vmatprep.subr.bf16.mxu1 %v1501_v25 }
  0x9c   :  { %1254 = vmatpush3.bf16.msra.mxu0 %v1364_v29 }
  0x9d   :  { %1255 = vmatprep.subr.bf16.mxu0 %v1501_v25 }
  0x9e   :  { %1274 = vmatpush3.bf16.msra.mxu1 %v1372_v37 }
  0x9f   :  { %1275 = vmatprep.subr.bf16.mxu1 %v1501_v25 }
  0xa0   :  { %1256 = vmatpush3.bf16.msra.mxu0 %v1365_v30 }
  0xa1   :  { %1257 = vmatprep.subr.bf16.mxu0 %v1501_v25 }
  0xa2   :  { %1276 = vmatpush3.bf16.msra.mxu1 %v1373_v38 }
  0xa3   :  { %1277 = vmatprep.subr.bf16.mxu1 %v1501_v25 }
  0xa4   :  { %1258 = vmatpush3.bf16.msra.mxu0 %v1366_v31 }
  0xa5   :  { %1259 = vmatprep.subr.bf16.mxu0 %v1501_v25 }
  0xa6   :  { %1278 = vmatpush3.bf16.msra.mxu1 %v1374_v11 }
  0xa7   :  { %1279 = vmatprep.subr.bf16.mxu1 %v1501_v25 }
  0xa8   :  { %1260 = vmatpush3.bf16.msra.mxu0 %v1367_v32 }
  0xaa   :  { %1280 = vmatpush3.bf16.msra.mxu1 %v1375_v12 }
 0x13e   :  { %v1155_v39 = vpop.f32.mrb[0].mxu0 }
 0x13f   :  { %v1177_v40 = vpop.f32.mrb[0].mxu1  ;;  %v1156_v42 = vpop.f32.mrb[1].mxu0 }
 0x140   :  { %v1157_v43 = vadd.f32 %v1156_v42, %v1155_v39  ;;  %v1178_v44 = vpop.f32.mrb[1].mxu1  ;;  %v1158_v45 = vpop.f32.mrb[2].mxu0 }
 0x141   :  { %v1179_v46 = vadd.f32 %v1178_v44, %v1177_v40  ;;  %v1180_v47 = vpop.f32.mrb[2].mxu1  ;;  %v1159_v48 = vpop.f32.mrb[3].mxu0 }
 0x142   :  { %v661_v49 = vadd.f32 %v1157_v43, %v1047_v41  ;;  %v1160_v50 = vadd.f32 %v1159_v48, %v1158_v45  ;;  %v1181_v51 = vpop.f32.mrb[3].mxu1 }
 0x143   :  { %v1182_v52 = vadd.f32 %v1181_v51, %v1180_v47 }
 0x144   :  { %v702_v53 = vadd.f32 %v1179_v46, %v661_v49  ;;  %v664_v54 = vadd.f32 %v1160_v50, %v1047_v41 }
 0x146   :  { %v705_v55 = vadd.f32 %v1182_v52, %v664_v54 }
 0x15e   :  { %v1199_v56 = vpop.f32.mrb[4].mxu0 }
 0x15f   :  { %v1221_v57 = vpop.f32.mrb[4].mxu1  ;;  %v1200_v58 = vpop.f32.mrb[5].mxu0 }
 0x160   :  { %v1201_v59 = vadd.f32 %v1200_v58, %v1199_v56  ;;  %v1222_v60 = vpop.f32.mrb[5].mxu1  ;;  %v1202_v61 = vpop.f32.mrb[6].mxu0 }
 0x161   :  { %v1223_v62 = vadd.f32 %v1222_v60, %v1221_v57  ;;  %v1224_v63 = vpop.f32.mrb[6].mxu1  ;;  %v1203_v0 = vpop.f32.mrb[7].mxu0 }
 0x162   :  { %v743_v1 = vadd.f32 %v1201_v59, %v702_v53  ;;  %v1204_v2 = vadd.f32 %v1203_v0, %v1202_v61  ;;  %v1225_v3 = vpop.f32.mrb[7].mxu1 }
 0x163   :  { %v1226_v4 = vadd.f32 %v1225_v3, %v1224_v63 }
 0x164   :  { %v784_v5 = vadd.f32 %v1223_v62, %v743_v1  ;;  %v746_v6 = vadd.f32 %v1204_v2, %v705_v55 }
 0x166   :  { %v787_v7 = vadd.f32 %v1226_v4, %v746_v6 }
 0x168   :  { %v790_v8 = vpack.c.bf16 %v787_v7, %v784_v5 }
 0x16a   :  { %v791_v10 = vmax.bf16 %v1503_v9, %v790_v8 }
 0x16c   :  { %1262 = vmatmul.mubr.bf16.vlgmr.msra.gmra.mrb[8].mxu0 %v791_v10 }
 0x23f   :  { %v897_v14 = vpop.f32.mrb[8].mxu0 }
 0x240   :  { %v1263_v15 = vpop.f32.mrb[9].mxu0  ;;  %v898_v17 = vadd.f32 %v1112_v13, %v897_v14 }
 0x241   :  { %v900_v16 = vpop.f32.mrb[10].mxu0 }
 0x242   :  { %v901_v18 = vadd.f32 %v1112_v13, %v900_v16  ;;  %v1264_v19 = vpop.f32.mrb[11].mxu0 }
 0x244   :  { %v904_v20 = vpack.c.bf16 %v901_v18, %v898_v17 }
 0x246   :  { %v905_v21 = vmax.bf16 %v1503_v9, %v904_v20 }
 0x248   :  { %1282 = vmatmul.mubr.bf16.vlgmr.msra.gmra.mrb[8].mxu1 %v905_v21 }
 0x31b   :  { %v1011_v23 = vpop.f32.mrb[8].mxu1 }
 0x31c   :  { %v1283_v24 = vpop.f32.mrb[9].mxu1  ;;  %v1012_v26 = vadd.f32 %v1121_v22, %v1011_v23 }
 0x31d   :  { %v1014_v25 = vpop.f32.mrb[10].mxu1 }
 0x31e   :  { %v1015_v27 = vadd.f32 %v1121_v22, %v1014_v25  ;;  %v1284_v28 = vpop.f32.mrb[11].mxu1 }
 0x320   :  { %v1137_v29 = vpack.c.bf16 %v1015_v27, %v1012_v26 }
 0x322   :  { %1138 = vst [vmem:[#allocation10] sm:$0xff] %v1137_v29  }
 0x323   :  { %1475 = shalt.err (!%p1472_p8)
}
 0x324   :  { %s1476_s13 = scalar_lea.hbm %s1652_s7, 128 }
 0x325   :  { %p1477_p9 = scmp.ne.s32.totalorder %s1652_s7, %s1476_s13  ;;  %p1480_p10 = scmp.lt.u32.totalorder %s1476_s13, %s1652_s7 }
 0x327   :  { %p1482_p11 = pnand %p1480_p10, %p1477_p9 }
 0x329   :  { %1485 = shalt.err (!%p1482_p11)
}
 0x32a   :  { %1039 = dma.vmem_to_hbm [thread:$0]  %s1034_s9, 128, %s1652_s7, [#allocation4], %s1495_s11, %s1495_s11, %s1496_s12  }
 0x32b   :  { %1492 = dma.done.wait [#allocation4], 128  }
 0x32c   :  { %1493 = vsyncadd [#allocation4], 4294967168 }
 0x32d   :  { %1043 = vsyncpa [#allocation3], 1 }
 0x32e   :  { %1044 = vsyncpa [#allocation6], 1 }
 0x32f   :  { %1045 = vsyncpa [#allocation9], 1 }
 0x330   :  { %1046 = vsyncpa [#allocation4], 1 }

// kernel: tpu_custom_call.1
= control target key start
LH: loop header
LB: loop body
LE: loop exit
PB: predicated region body
PF: predicated region fallthrough
CT: control target
= control target key end

     0   :  { %12 = vsyncpa [#allocation3], 0  ;;  %s1645_s0 = inlined_call_operand.hbm [shape: f32[16,1024], index: 0, kind: input, shape index: {}]   ;;  %s1646_s1 = inlined_call_operand.hbm [shape: bf16[1024,128], index: 1, kind: input, shape index: {}]   ;;  %s1647_s2 = inlined_call_operand.vmem [shape: f32[1,128], index: 2, kind: input, shape index: {}]   ;;  %s1648_s3 = inlined_call_operand.hbm [shape: bf16[128,128], index: 3, kind: input, shape index: {}]   ;;  %s1649_s4 = inlined_call_operand.vmem [shape: f32[1,128], index: 4, kind: input, shape index: {}]   ;;  %s1650_s5 = inlined_call_operand.hbm [shape: bf16[128,128], index: 5, kind: input, shape index: {}]   ;;  %s1651_s6 = inlined_call_operand.vmem [shape: f32[1,128], index: 6, kind: input, shape index: {}]   ;;  %s1652_s7 = inlined_call_operand.hbm [shape: bf16[16,128], index: 7, kind: output, shape index: {}]  }
   0x1   :  { %13 = vsyncpa [#allocation6], 0 }
   0x2   :  { %14 = vsyncpa [#allocation9], 0 }
   0x3   :  { %15 = vsyncpa [#allocation4], 0  ;;  %s1494_s24 = smov [#allocation5]   ;;  %s1376_s28 = scalar_lea.hbm %s1646_s1, 8192 }
   0x4   :  { %s33_s25 = sshll.u32 %s1494_s24, 4  ;;  %p1377_p0 = scmp.ne.s32.totalorder %s1646_s1, %s1376_s28  ;;  %s34_s25 = int_to_ptr.vmem [resolvable:$true] %s33_s25 }
   0x5   :  { %p1380_p1 = scmp.lt.u32.totalorder %s1376_s28, %s1646_s1 }
   0x7   :  { %p1382_p2 = pnand %p1380_p1, %p1377_p0 }
   0x9   :  { %1385 = shalt.err (!%p1382_p2)
}
   0xa   :  { %s1386_s10 = scalar_lea.vmem %s34_s25, 8192  ;;  %p1391_p4 = scmp.lt.s32.totalorder %s34_s25, %s34_s25 }
   0xb   :  { %p1387_p3 = scmp.ne.s32.totalorder %s34_s25, %s1386_s10  ;;  %p1392_p5 = scmp.lt.s32.totalorder %s1386_s10, %s1386_s10 }
   0xd   :  { %p1393_p6 = por %p1392_p5, %p1391_p4 }
   0xf   :  { %p1394_p7 = pnand %p1393_p6, %p1387_p3 }
  0x11   :  { %1397 = shalt.err (!%p1394_p7)
}
  0x12   :  { %s1495_s11 = smov 64   ;;  %s1496_s12 = smov 4  }
  0x13   :  { %39 = dma.hbm_to_vmem [thread:$0]  %s1646_s1, 8192, %s34_s25, [#allocation6], %s1495_s11, %s1495_s11, %s1496_s12  }
  0x14   :  { %s1497_s15 = smov [#allocation2]   ;;  %s1398_s19 = scalar_lea.hbm %s1645_s0, 2048 }
  0x15   :  { %s21_s16 = sshll.u32 %s1497_s15, 4  ;;  %p1399_p8 = scmp.ne.s32.totalorder %s1645_s0, %s1398_s19  ;;  %s22_s16 = int_to_ptr.vmem [resolvable:$true] %s21_s16 }
  0x16   :  { %p1402_p9 = scmp.lt.u32.totalorder %s1398_s19, %s1645_s0 }
  0x18   :  { %p1404_p10 = pnand %p1402_p9, %p1399_p8 }
  0x1a   :  { %1407 = shalt.err (!%p1404_p10)
}
  0x1b   :  { %s1408_s24 = scalar_lea.vmem %s22_s16, 2048  ;;  %p1413_p12 = scmp.lt.s32.totalorder %s22_s16, %s22_s16 }
  0x1c   :  { %p1409_p11 = scmp.ne.s32.totalorder %s22_s16, %s1408_s24  ;;  %p1414_p13 = scmp.lt.s32.totalorder %s1408_s24, %s1408_s24 }
  0x1e   :  { %p1415_p0 = por %p1414_p13, %p1413_p12 }
  0x20   :  { %p1416_p1 = pnand %p1415_p0, %p1409_p11 }
  0x22   :  { %1419 = shalt.err (!%p1416_p1)
}
  0x23   :  { %s1498_s1 = smov 1024   ;;  %s1499_s27 = smov [#allocation7]  }
  0x24   :  { %27 = dma.hbm_to_vmem [thread:$0]  %s1645_s0, 2048, %s22_s16, [#allocation3], %s1498_s1, %s1498_s1, %s1495_s11  }
  0x25   :  { %s47_s28 = sshll.u32 %s1499_s27, 4  ;;  %s1500_s29 = smov [#allocation8]   ;;  %s48_s28 = int_to_ptr.vmem [resolvable:$true] %s47_s28 }
  0x26   :  { %s61_s30 = sshll.u32 %s1500_s29, 4  ;;  %s1420_s10 = scalar_lea.hbm %s1648_s3, 1024  ;;  %s62_s30 = int_to_ptr.vmem [resolvable:$true] %s61_s30 }
  0x27   :  { %p1421_p2 = scmp.ne.s32.totalorder %s1648_s3, %s1420_s10  ;;  %p1424_p3 = scmp.lt.u32.totalorder %s1420_s10, %s1648_s3 }
  0x29   :  { %p1426_p4 = pnand %p1424_p3, %p1421_p2 }
  0x2b   :  { %1429 = shalt.err (!%p1426_p4)
}
  0x2c   :  { %s1430_s0 = scalar_lea.vmem %s48_s28, 1024  ;;  %p1435_p6 = scmp.lt.s32.totalorder %s48_s28, %s48_s28 }
  0x2d   :  { %p1431_p5 = scmp.ne.s32.totalorder %s48_s28, %s1430_s0  ;;  %p1436_p7 = scmp.lt.s32.totalorder %s1430_s0, %s1430_s0 }
  0x2f   :  { %p1437_p8 = por %p1436_p7, %p1435_p6 }
  0x31   :  { %p1438_p9 = pnand %p1437_p8, %p1431_p5 }
  0x33   :  { %1441 = shalt.err (!%p1438_p9)
}
  0x34   :  { %53 = dma.hbm_to_vmem [thread:$0]  %s1648_s3, 1024, %s48_s28, [#allocation6], %s1495_s11, %s1495_s11, %s1496_s12  }
  0x35   :  { %s1442_s21 = scalar_lea.hbm %s1650_s5, 1024 }
  0x36   :  { %p1443_p10 = scmp.ne.s32.totalorder %s1650_s5, %s1442_s21  ;;  %p1446_p11 = scmp.lt.u32.totalorder %s1442_s21, %s1650_s5 }
  0x38   :  { %p1448_p12 = pnand %p1446_p11, %p1443_p10 }
  0x3a   :  { %1451 = shalt.err (!%p1448_p12)
}
  0x3b   :  { %s1452_s25 = scalar_lea.vmem %s62_s30, 1024  ;;  %p1457_p0 = scmp.lt.s32.totalorder %s62_s30, %s62_s30 }
  0x3c   :  { %p1453_p13 = scmp.ne.s32.totalorder %s62_s30, %s1452_s25  ;;  %p1458_p1 = scmp.lt.s32.totalorder %s1452_s25, %s1452_s25 }
  0x3e   :  { %p1459_p2 = por %p1458_p1, %p1457_p0 }
  0x40   :  { %p1460_p3 = pnand %p1459_p2, %p1453_p13 }
  0x42   :  { %1463 = shalt.err (!%p1460_p3)
}
  0x43   :  { %67 = dma.hbm_to_vmem [thread:$0]  %s1650_s5, 1024, %s62_s30, [#allocation9], %s1495_s11, %s1495_s11, %s1496_s12  }
  0x44   :  { %1486 = dma.done.wait [#allocation3], 2048  }
  0x45   :  { %1487 = vsyncadd [#allocation3], 4294965248 }
  0x46   :  { %1488 = dma.done.wait [#allocation6], 9216  }
  0x47   :  { %1489 = vsyncadd [#allocation6], 4294958080 }
  0x48   :  { %1490 = dma.done.wait [#allocation9], 1024  }
  0x49   :  { %1491 = vsyncadd [#allocation9], 4294966272  ;;  %v1296_v0 = vld [vmem:[#allocation5 + $0x40] sm:$0xff]   ;;  %v1300_v4 = vld [vmem:[#allocation5 + $0x48] sm:$0xff]   ;;  %vm1502_vm0 = vmmov 0   ;;  %s1504_s8 = smov [#allocation10]  }
  0x4a   :  { %v1297_v1 = vld [vmem:[#allocation5 + $0xc0] sm:$0xff]   ;;  %1139 = vmatprep.subr.bf16.mxu0 %v1296_v0  ;;  %v1301_v5 = vld [vmem:[#allocation5 + $0xc8] sm:$0xff]   ;;  %v1304_v8 = vld [vmem:[#allocation5 + $0x50] sm:$0xff]   ;;  %s1033_s9 = sshll.u32 %s1504_s8, 4  ;;  %s1034_s9 = int_to_ptr.vmem [resolvable:$true] %s1033_s9 }
  0x4b   :  { %v1298_v2 = vld [vmem:[#allocation5] sm:$0xff]   ;;  %1161 = vmatprep.subr.bf16.mxu1 %v1297_v1  ;;  %v1302_v6 = vld [vmem:[#allocation5 + $0x8] sm:$0xff]   ;;  %v1305_v9 = vld [vmem:[#allocation5 + $0xd0] sm:$0xff]   ;;  %p1469_p5 = scmp.lt.s32.totalorder %s1034_s9, %s1034_s9 }
  0x4c   :  { %v1299_v3 = vld [vmem:[#allocation5 + $0x80] sm:$0xff]   ;;  %1140 = vmatpush3.bf16.msra.mxu0 %v1298_v2  ;;  %v1303_v7 = vld [vmem:[#allocation5 + $0x88] sm:$0xff]   ;;  %v1306_v10 = vld [vmem:[#allocation5 + $0x10] sm:$0xff]  }
  0x4d   :  { %1162 = vmatpush3.bf16.msra.mxu1 %v1299_v3  ;;  %1141 = vmatprep.subr.bf16.mxu0 %v1300_v4  ;;  %v1307_v11 = vld [vmem:[#allocation5 + $0x90] sm:$0xff]   ;;  %v1308_v12 = vld [vmem:[#allocation5 + $0x58] sm:$0xff]   ;;  %v1312_v16 = vld [vmem:[#allocation5 + $0x60] sm:$0xff]  }
  0x4e   :  { %1163 = vmatprep.subr.bf16.mxu1 %v1301_v5  ;;  %v1309_v13 = vld [vmem:[#allocation5 + $0xd8] sm:$0xff]   ;;  %v1313_v17 = vld [vmem:[#allocation5 + $0xe0] sm:$0xff]   ;;  %v1316_v20 = vld [vmem:[#allocation5 + $0x68] sm:$0xff]  }
  0x4f   :  { %v1310_v14 = vld [vmem:[#allocation5 + $0x18] sm:$0xff]   ;;  %v1314_v18 = vld [vmem:[#allocation5 + $0x20] sm:$0xff]   ;;  %v1317_v21 = vld [vmem:[#allocation5 + $0xe8] sm:$0xff]  }
  0x50   :  { %1142 = vmatpush3.bf16.msra.mxu0 %v1302_v6  ;;  %v1311_v15 = vld [vmem:[#allocation5 + $0x98] sm:$0xff]   ;;  %v1315_v19 = vld [vmem:[#allocation5 + $0xa0] sm:$0xff]   ;;  %v1318_v22 = vld [vmem:[#allocation5 + $0x28] sm:$0xff]  }
  0x51   :  { %1164 = vmatpush3.bf16.msra.mxu1 %v1303_v7  ;;  %1143 = vmatprep.subr.bf16.mxu0 %v1304_v8  ;;  %v1319_v23 = vld [vmem:[#allocation5 + $0xa8] sm:$0xff]   ;;  %v1320_v24 = vld [vmem:[#allocation5 + $0x70] sm:$0xff]   ;;  %v1324_v28 = vld [vmem:[#allocation5 + $0x78] sm:$0xff]  }
  0x52   :  { %1165 = vmatprep.subr.bf16.mxu1 %v1305_v9  ;;  %v1321_v25 = vld [vmem:[#allocation5 + $0xf0] sm:$0xff]   ;;  %v1325_v29 = vld [vmem:[#allocation5 + $0xf8] sm:$0xff]   ;;  %v84_v32 = vld [vmem:[#allocation2 + $0x8] sm:$0xff] }
  0x53   :  { %v1322_v26 = vld [vmem:[#allocation5 + $0x30] sm:$0xff]   ;;  %v1326_v30 = vld [vmem:[#allocation5 + $0x38] sm:$0xff]   ;;  %v92_v33 = vld [vmem:[#allocation2 + $0x48] sm:$0xff] }
  0x54   :  { %1144 = vmatpush3.bf16.msra.mxu0 %v1306_v10  ;;  %v1323_v27 = vld [vmem:[#allocation5 + $0xb0] sm:$0xff]   ;;  %v1327_v31 = vld [vmem:[#allocation5 + $0xb8] sm:$0xff]   ;;  %v100_v35 = vpack.c.bf16 %v92_v33, %v84_v32  ;;  %v83_v37 = vld [vmem:[#allocation2] sm:$0xff] }
  0x55   :  { %1166 = vmatpush3.bf16.msra.mxu1 %v1307_v11  ;;  %1145 = vmatprep.subr.bf16.mxu0 %v1308_v12  ;;  %v86_v34 = vld [vmem:[#allocation2 + $0x18] sm:$0xff]  ;;  %v91_v38 = vld [vmem:[#allocation2 + $0x40] sm:$0xff]  ;;  %v85_v41 = vld [vmem:[#allocation2 + $0x10] sm:$0xff] }
  0x56   :  { %1167 = vmatprep.subr.bf16.mxu1 %v1309_v13  ;;  %v94_v36 = vld [vmem:[#allocation2 + $0x58] sm:$0xff]  ;;  %v99_v40 = vpack.c.bf16 %v91_v38, %v83_v37  ;;  %v93_v42 = vld [vmem:[#allocation2 + $0x50] sm:$0xff]  ;;  %658 = vmatprep.mubr.bf16.mxu0 %v100_v35  ;;  %v1328_v44 = vld [vmem:[#allocation5 + $0x140] sm:$0xff]  }
  0x57   :  { %v102_v39 = vpack.c.bf16 %v94_v36, %v86_v34  ;;  %v101_v43 = vpack.c.bf16 %v93_v42, %v85_v41  ;;  %v1329_v45 = vld [vmem:[#allocation5 + $0x1c0] sm:$0xff]   ;;  %v1332_v48 = vld [vmem:[#allocation5 + $0x148] sm:$0xff]   ;;  %v1336_v52 = vld [vmem:[#allocation5 + $0x150] sm:$0xff]  }
  0x58   :  { %1146 = vmatpush3.bf16.msra.mxu0 %v1310_v14  ;;  %v1330_v46 = vld [vmem:[#allocation5 + $0x100] sm:$0xff]   ;;  %v1333_v49 = vld [vmem:[#allocation5 + $0x1c8] sm:$0xff]   ;;  %v1337_v53 = vld [vmem:[#allocation5 + $0x1d0] sm:$0xff]  }
  0x59   :  { %1168 = vmatpush3.bf16.msra.mxu1 %v1311_v15  ;;  %1147 = vmatprep.subr.bf16.mxu0 %v1312_v16  ;;  %v1331_v47 = vld [vmem:[#allocation5 + $0x180] sm:$0xff]   ;;  %v1334_v50 = vld [vmem:[#allocation5 + $0x108] sm:$0xff]   ;;  %v1338_v54 = vld [vmem:[#allocation5 + $0x110] sm:$0xff]  }
  0x5a   :  { %1169 = vmatprep.subr.bf16.mxu1 %v1313_v17  ;;  %699 = vmatprep.mubr.bf16.mxu1 %v102_v39  ;;  %v1335_v51 = vld [vmem:[#allocation5 + $0x188] sm:$0xff]   ;;  %v1339_v55 = vld [vmem:[#allocation5 + $0x190] sm:$0xff]   ;;  %v1340_v56 = vld [vmem:[#allocation5 + $0x158] sm:$0xff]  }
  0x5b   :  { %v1341_v57 = vld [vmem:[#allocation5 + $0x1d8] sm:$0xff]   ;;  %v1344_v60 = vld [vmem:[#allocation5 + $0x160] sm:$0xff]   ;;  %v1348_v0 = vld [vmem:[#allocation5 + $0x168] sm:$0xff]  }
  0x5c   :  { %1148 = vmatpush3.bf16.msra.mxu0 %v1314_v18  ;;  %v1342_v58 = vld [vmem:[#allocation5 + $0x118] sm:$0xff]   ;;  %v1345_v61 = vld [vmem:[#allocation5 + $0x1e0] sm:$0xff]   ;;  %v1349_v1 = vld [vmem:[#allocation5 + $0x1e8] sm:$0xff]  }
  0x5d   :  { %1170 = vmatpush3.bf16.msra.mxu1 %v1315_v19  ;;  %1149 = vmatprep.subr.bf16.mxu0 %v1316_v20  ;;  %v1343_v59 = vld [vmem:[#allocation5 + $0x198] sm:$0xff]   ;;  %v1346_v62 = vld [vmem:[#allocation5 + $0x120] sm:$0xff]   ;;  %v1350_v2 = vld [vmem:[#allocation5 + $0x128] sm:$0xff]  }
  0x5e   :  { %1171 = vmatprep.subr.bf16.mxu1 %v1317_v21  ;;  %v1347_v63 = vld [vmem:[#allocation5 + $0x1a0] sm:$0xff]   ;;  %v1351_v3 = vld [vmem:[#allocation5 + $0x1a8] sm:$0xff]   ;;  %v1352_v4 = vld [vmem:[#allocation5 + $0x170] sm:$0xff]  }
  0x5f   :  { %v1353_v5 = vld [vmem:[#allocation5 + $0x1f0] sm:$0xff]   ;;  %v1356_v8 = vld [vmem:[#allocation5 + $0x178] sm:$0xff]   ;;  %v88_v12 = vld [vmem:[#allocation2 + $0x28] sm:$0xff] }
  0x60   :  { %1150 = vmatpush3.bf16.msra.mxu0 %v1318_v22  ;;  %v1354_v6 = vld [vmem:[#allocation5 + $0x130] sm:$0xff]   ;;  %v1357_v9 = vld [vmem:[#allocation5 + $0x1f8] sm:$0xff]   ;;  %v96_v13 = vld [vmem:[#allocation2 + $0x68] sm:$0xff] }
  0x61   :  { %1172 = vmatpush3.bf16.msra.mxu1 %v1319_v23  ;;  %1151 = vmatprep.subr.bf16.mxu0 %v1320_v24  ;;  %v1355_v7 = vld [vmem:[#allocation5 + $0x1b0] sm:$0xff]   ;;  %v1358_v10 = vld [vmem:[#allocation5 + $0x138] sm:$0xff]   ;;  %v104_v16 = vpack.c.bf16 %v96_v13, %v88_v12  ;;  %v87_v18 = vld [vmem:[#allocation2 + $0x20] sm:$0xff] }
  0x62   :  { %1173 = vmatprep.subr.bf16.mxu1 %v1321_v25  ;;  %v1359_v11 = vld [vmem:[#allocation5 + $0x1b8] sm:$0xff]   ;;  %v95_v19 = vld [vmem:[#allocation2 + $0x60] sm:$0xff]  ;;  %v89_v20 = vld [vmem:[#allocation2 + $0x30] sm:$0xff]  ;;  %v1501_v25 = vmov 0.0  }
  0x63   :  { %v90_v14 = vld [vmem:[#allocation2 + $0x38] sm:$0xff]  ;;  %v103_v21 = vpack.c.bf16 %v95_v19, %v87_v18  ;;  %v97_v22 = vld [vmem:[#allocation2 + $0x70] sm:$0xff]  ;;  %v1360_v24 = vld [vmem:[#allocation7] sm:$0xff]  }
  0x64   :  { %1152 = vmatpush3.bf16.msra.mxu0 %v1322_v26  ;;  %v98_v15 = vld [vmem:[#allocation2 + $0x78] sm:$0xff]  ;;  %v105_v23 = vpack.c.bf16 %v97_v22, %v89_v20  ;;  %v1361_v26 = vld [vmem:[#allocation7 + $0x8] sm:$0xff]   ;;  %v1368_v33 = vld [vmem:[#allocation8] sm:$0xff]  }
  0x65   :  { %1174 = vmatpush3.bf16.msra.mxu1 %v1323_v27  ;;  %1153 = vmatprep.subr.bf16.mxu0 %v1324_v28  ;;  %v106_v17 = vpack.c.bf16 %v98_v15, %v90_v14  ;;  %v1362_v27 = vld [vmem:[#allocation7 + $0x10] sm:$0xff]   ;;  %v1363_v28 = vld [vmem:[#allocation7 + $0x18] sm:$0xff]   ;;  %v1369_v34 = vld [vmem:[#allocation8 + $0x8] sm:$0xff]  }
  0x66   :  { %1175 = vmatprep.subr.bf16.mxu1 %v1325_v29  ;;  %v1364_v29 = vld [vmem:[#allocation7 + $0x20] sm:$0xff]   ;;  %v1367_v32 = vld [vmem:[#allocation7 + $0x38] sm:$0xff]   ;;  %v1370_v35 = vld [vmem:[#allocation8 + $0x10] sm:$0xff]  }
  0x67   :  { %v1371_v36 = vld [vmem:[#allocation8 + $0x18] sm:$0xff]   ;;  %v1372_v37 = vld [vmem:[#allocation8 + $0x20] sm:$0xff]   ;;  %v1373_v38 = vld [vmem:[#allocation8 + $0x28] sm:$0xff]  }
  0x68   :  { %1154 = vmatpush3.bf16.msra.mxu0 %v1326_v30  ;;  %v1365_v30 = vld [vmem:[#allocation7 + $0x28] sm:$0xff]   ;;  %v1047_v41 = vld [vmem:[%s1647_s2] ss:$0 sm:$0xff]  ;;  %v1375_v12 = vld [vmem:[#allocation8 + $0x38] sm:$0xff]  }
  0x69   :  { %1176 = vmatpush3.bf16.msra.mxu1 %v1327_v31  ;;  %1183 = vmatprep.subr.bf16.mxu0 %v1328_v44  ;;  %v1366_v31 = vld [vmem:[#allocation7 + $0x30] sm:$0xff]   ;;  %v1112_v13 = vld [vmem:[%s1649_s4] ss:$0 sm:$0xff]  ;;  %s1464_s4 = scalar_lea.vmem %s1034_s9, 128 }
  0x6a   :  { %1205 = vmatprep.subr.bf16.mxu1 %v1329_v45  ;;  %v1121_v22 = vld [vmem:[%s1651_s6] ss:$0 sm:$0xff]  ;;  %p1465_p4 = scmp.ne.s32.totalorder %s1034_s9, %s1464_s4  ;;  %p1470_p6 = scmp.lt.s32.totalorder %s1464_s4, %s1464_s4 }
  0x6b   :  { %659 = vmatmul.mubr.bf16.vlgmr.msra.gmra.mrb[0].mxu0 %v99_v40 }
  0x6c   :  { %700 = vmatmul.mubr.bf16.vlgmr.msra.gmra.mrb[0].mxu1 %v101_v43  ;;  %1184 = vmatpush3.bf16.msra.mxu0 %v1330_v46  ;;  %p1471_p7 = por %p1470_p6, %p1469_p5 }
  0x6d   :  { %1206 = vmatpush3.bf16.msra.mxu1 %v1331_v47  ;;  %1185 = vmatprep.subr.bf16.mxu0 %v1332_v48 }
  0x6e   :  { %1207 = vmatprep.subr.bf16.mxu1 %v1333_v49  ;;  %740 = vmatprep.mubr.bf16.mxu0 %v104_v16  ;;  %p1472_p8 = pnand %p1471_p7, %p1465_p4 }
  0x6f   :  { %781 = vmatprep.mubr.bf16.mxu1 %v106_v17 }
  0x70   :  { %1186 = vmatpush3.bf16.msra.mxu0 %v1334_v50 }
  0x71   :  { %1208 = vmatpush3.bf16.msra.mxu1 %v1335_v51  ;;  %1187 = vmatprep.subr.bf16.mxu0 %v1336_v52 }
  0x72   :  { %1209 = vmatprep.subr.bf16.mxu1 %v1337_v53 }
  0x74   :  { %1188 = vmatpush3.bf16.msra.mxu0 %v1338_v54 }
  0x75   :  { %1210 = vmatpush3.bf16.msra.mxu1 %v1339_v55  ;;  %1189 = vmatprep.subr.bf16.mxu0 %v1340_v56 }
  0x76   :  { %1211 = vmatprep.subr.bf16.mxu1 %v1341_v57 }
  0x78   :  { %1190 = vmatpush3.bf16.msra.mxu0 %v1342_v58 }
  0x79   :  { %1212 = vmatpush3.bf16.msra.mxu1 %v1343_v59  ;;  %1191 = vmatprep.subr.bf16.mxu0 %v1344_v60 }
  0x7a   :  { %1213 = vmatprep.subr.bf16.mxu1 %v1345_v61 }
  0x7c   :  { %1192 = vmatpush3.bf16.msra.mxu0 %v1346_v62 }
  0x7d   :  { %1214 = vmatpush3.bf16.msra.mxu1 %v1347_v63  ;;  %1193 = vmatprep.subr.bf16.mxu0 %v1348_v0 }
  0x7e   :  { %1215 = vmatprep.subr.bf16.mxu1 %v1349_v1 }
  0x80   :  { %1194 = vmatpush3.bf16.msra.mxu0 %v1350_v2 }
  0x81   :  { %1216 = vmatpush3.bf16.msra.mxu1 %v1351_v3  ;;  %1195 = vmatprep.subr.bf16.mxu0 %v1352_v4 }
  0x82   :  { %1217 = vmatprep.subr.bf16.mxu1 %v1353_v5 }
  0x84   :  { %1196 = vmatpush3.bf16.msra.mxu0 %v1354_v6 }
  0x85   :  { %1218 = vmatpush3.bf16.msra.mxu1 %v1355_v7  ;;  %1197 = vmatprep.subr.bf16.mxu0 %v1356_v8 }
  0x86   :  { %1219 = vmatprep.subr.bf16.mxu1 %v1357_v9  ;;  %v1503_v9 = vmov 0  }
  0x88   :  { %1198 = vmatpush3.bf16.msra.mxu0 %v1358_v10 }
  0x89   :  { %1220 = vmatpush3.bf16.msra.mxu1 %v1359_v11  ;;  %1245 = vmatprep.subr.bf16.mxu0 %v1501_v25  ;;  %v1374_v11 = vld [vmem:[#allocation8 + $0x30] sm:$0xff]  }
  0x8a   :  { %1265 = vmatprep.subr.bf16.mxu1 %v1501_v25 }
  0x8b   :  { %741 = vmatmul.mubr.bf16.vlgmr.msra.gmra.mrb[4].mxu0 %v103_v21 }
  0x8c   :  { %782 = vmatmul.mubr.bf16.vlgmr.msra.gmra.mrb[4].mxu1 %v105_v23  ;;  %1246 = vmatpush3.bf16.msra.mxu0 %v1360_v24 }
  0x8d   :  { %1247 = vmatprep.subr.bf16.mxu0 %v1501_v25  ;;  %1261 = vmatprep.mubr.msk.bf16.mxu0 %vm1502_vm0, %v1501_v25 }
  0x8e   :  { %1281 = vmatprep.mubr.msk.bf16.mxu1 %vm1502_vm0, %v1501_v25  ;;  %1266 = vmatpush3.bf16.msra.mxu1 %v1368_v33 }
  0x8f   :  { %1267 = vmatprep.subr.bf16.mxu1 %v1501_v25 }
  0x90   :  { %1248 = vmatpush3.bf16.msra.mxu0 %v1361_v26 }
  0x91   :  { %1249 = vmatprep.subr.bf16.mxu0 %v1501_v25 }
  0x92   :  { %1268 = vmatpush3.bf16.msra.mxu1 %v1369_v34 }
  0x93   :  { %1269 = vmatprep.subr.bf16.mxu1 %v1501_v25 }
  0x94   :  { %1250 = vmatpush3.bf16.msra.mxu0 %v1362_v27 }
  0x95   :  { %1251 = vmatprep.subr.bf16.mxu0 %v1501_v25 }
  0x96   :  { %1270 = vmatpush3.bf16.msra.mxu1 %v1370_v35 }
  0x97   :  { %1271 = vmatprep.subr.bf16.mxu1 %v1501_v25 }
  0x98   :  { %1252 = vmatpush3.bf16.msra.mxu0 %v1363_v28 }
  0x99   :  { %1253 = vmatprep.subr.bf16.mxu0 %v1501_v25 }
  0x9a   :  { %1272 = vmatpush3.bf16.msra.mxu1 %v1371_v36 }
  0x9b   :  { %1273 = vmatprep.subr.bf16.mxu1 %v1501_v25 }
  0x9c   :  { %1254 = vmatpush3.bf16.msra.mxu0 %v1364_v29 }
  0x9d   :  { %1255 = vmatprep.subr.bf16.mxu0 %v1501_v25 }
  0x9e   :  { %1274 = vmatpush3.bf16.msra.mxu1 %v1372_v37 }
  0x9f   :  { %1275 = vmatprep.subr.bf16.mxu1 %v1501_v25 }
  0xa0   :  { %1256 = vmatpush3.bf16.msra.mxu0 %v1365_v30 }
  0xa1   :  { %1257 = vmatprep.subr.bf16.mxu0 %v1501_v25 }
  0xa2   :  { %1276 = vmatpush3.bf16.msra.mxu1 %v1373_v38 }
  0xa3   :  { %1277 = vmatprep.subr.bf16.mxu1 %v1501_v25 }
  0xa4   :  { %1258 = vmatpush3.bf16.msra.mxu0 %v1366_v31 }
  0xa5   :  { %1259 = vmatprep.subr.bf16.mxu0 %v1501_v25 }
  0xa6   :  { %1278 = vmatpush3.bf16.msra.mxu1 %v1374_v11 }
  0xa7   :  { %1279 = vmatprep.subr.bf16.mxu1 %v1501_v25 }
  0xa8   :  { %1260 = vmatpush3.bf16.msra.mxu0 %v1367_v32 }
  0xaa   :  { %1280 = vmatpush3.bf16.msra.mxu1 %v1375_v12 }
 0x13e   :  { %v1155_v39 = vpop.f32.mrb[0].mxu0 }
 0x13f   :  { %v1177_v40 = vpop.f32.mrb[0].mxu1  ;;  %v1156_v42 = vpop.f32.mrb[1].mxu0 }
 0x140   :  { %v1157_v43 = vadd.f32 %v1156_v42, %v1155_v39  ;;  %v1178_v44 = vpop.f32.mrb[1].mxu1  ;;  %v1158_v45 = vpop.f32.mrb[2].mxu0 }
 0x141   :  { %v1179_v46 = vadd.f32 %v1178_v44, %v1177_v40  ;;  %v1180_v47 = vpop.f32.mrb[2].mxu1  ;;  %v1159_v48 = vpop.f32.mrb[3].mxu0 }
 0x142   :  { %v661_v49 = vadd.f32 %v1157_v43, %v1047_v41  ;;  %v1160_v50 = vadd.f32 %v1159_v48, %v1158_v45  ;;  %v1181_v51 = vpop.f32.mrb[3].mxu1 }
 0x143   :  { %v1182_v52 = vadd.f32 %v1181_v51, %v1180_v47 }
 0x144   :  { %v702_v53 = vadd.f32 %v1179_v46, %v661_v49  ;;  %v664_v54 = vadd.f32 %v1160_v50, %v1047_v41 }
 0x146   :  { %v705_v55 = vadd.f32 %v1182_v52, %v664_v54 }
 0x15e   :  { %v1199_v56 = vpop.f32.mrb[4].mxu0 }
 0x15f   :  { %v1221_v57 = vpop.f32.mrb[4].mxu1  ;;  %v1200_v58 = vpop.f32.mrb[5].mxu0 }
 0x160   :  { %v1201_v59 = vadd.f32 %v1200_v58, %v1199_v56  ;;  %v1222_v60 = vpop.f32.mrb[5].mxu1  ;;  %v1202_v61 = vpop.f32.mrb[6].mxu0 }
 0x161   :  { %v1223_v62 = vadd.f32 %v1222_v60, %v1221_v57  ;;  %v1224_v63 = vpop.f32.mrb[6].mxu1  ;;  %v1203_v0 = vpop.f32.mrb[7].mxu0 }
 0x162   :  { %v743_v1 = vadd.f32 %v1201_v59, %v702_v53  ;;  %v1204_v2 = vadd.f32 %v1203_v0, %v1202_v61  ;;  %v1225_v3 = vpop.f32.mrb[7].mxu1 }
 0x163   :  { %v1226_v4 = vadd.f32 %v1225_v3, %v1224_v63 }
 0x164   :  { %v784_v5 = vadd.f32 %v1223_v62, %v743_v1  ;;  %v746_v6 = vadd.f32 %v1204_v2, %v705_v55 }
 0x166   :  { %v787_v7 = vadd.f32 %v1226_v4, %v746_v6 }
 0x168   :  { %v790_v8 = vpack.c.bf16 %v787_v7, %v784_v5 }
 0x16a   :  { %v791_v10 = vmax.bf16 %v1503_v9, %v790_v8 }
 0x16c   :  { %1262 = vmatmul.mubr.bf16.vlgmr.msra.gmra.mrb[8].mxu0 %v791_v10 }
 0x23f   :  { %v897_v14 = vpop.f32.mrb[8].mxu0 }
 0x240   :  { %v1263_v15 = vpop.f32.mrb[9].mxu0  ;;  %v898_v17 = vadd.f32 %v1112_v13, %v897_v14 }
 0x241   :  { %v900_v16 = vpop.f32.mrb[10].mxu0 }
 0x242   :  { %v901_v18 = vadd.f32 %v1112_v13, %v900_v16  ;;  %v1264_v19 = vpop.f32.mrb[11].mxu0 }
 0x244   :  { %v904_v20 = vpack.c.bf16 %v901_v18, %v898_v17 }
 0x246   :  { %v905_v21 = vmax.bf16 %v1503_v9, %v904_v20 }
 0x248   :  { %1282 = vmatmul.mubr.bf16.vlgmr.msra.gmra.mrb[8].mxu1 %v905_v21 }
 0x31b   :  { %v1011_v23 = vpop.f32.mrb[8].mxu1 }
 0x31c   :  { %v1283_v24 = vpop.f32.mrb[9].mxu1  ;;  %v1012_v26 = vadd.f32 %v1121_v22, %v1011_v23 }
 0x31d   :  { %v1014_v25 = vpop.f32.mrb[10].mxu1 }
 0x31e   :  { %v1015_v27 = vadd.f32 %v1121_v22, %v1014_v25  ;;  %v1284_v28 = vpop.f32.mrb[11].mxu1 }
 0x320   :  { %v1137_v29 = vpack.c.bf16 %v1015_v27, %v1012_v26 }
 0x322   :  { %1138 = vst [vmem:[#allocation10] sm:$0xff] %v1137_v29  }
 0x323   :  { %1475 = shalt.err (!%p1472_p8)
}
 0x324   :  { %s1476_s13 = scalar_lea.hbm %s1652_s7, 128 }
 0x325   :  { %p1477_p9 = scmp.ne.s32.totalorder %s1652_s7, %s1476_s13  ;;  %p1480_p10 = scmp.lt.u32.totalorder %s1476_s13, %s1652_s7 }
 0x327   :  { %p1482_p11 = pnand %p1480_p10, %p1477_p9 }
 0x329   :  { %1485 = shalt.err (!%p1482_p11)
}
 0x32a   :  { %1039 = dma.vmem_to_hbm [thread:$0]  %s1034_s9, 128, %s1652_s7, [#allocation4], %s1495_s11, %s1495_s11, %s1496_s12  }
 0x32b   :  { %1492 = dma.done.wait [#allocation4], 128  }
 0x32c   :  { %1493 = vsyncadd [#allocation4], 4294967168 }
 0x32d   :  { %1043 = vsyncpa [#allocation3], 1 }
 0x32e   :  { %1044 = vsyncpa [#allocation6], 1 }
 0x32f   :  { %1045 = vsyncpa [#allocation9], 1 }
 0x330   :  { %1046 = vsyncpa [#allocation4], 1 }

</bundles_post_ra>
